<compile_context>
chip_gen: v7x
topology: tpu7x:2x2x1
jax: 0.10.0
libtpu: 0.0.40
codegen_flags: <defaults>
</compile_context>

<pallas_src>
import jax
import jax.numpy as jnp
from jax.experimental import pallas as pl
from jax.experimental.pallas import tpu as pltpu


# --------------------------------------------------------------------------
# Fused kernel: conv1 + ReLU + BN1 + convT(sub-pixel) + ReLU + BN2
# --------------------------------------------------------------------------

def _make_fused_kernel(N, Cin, Cmid, Cout, H, W):
    """Whole-batch fused decoder_Res18 forward.

    Flat geometry: each image is zero padded to (H+3) x Wp (Wp = W+2: 1 top,
    2 bottom, 1 left, 1 right) and flattened to length Lp.  Conv outputs are
    produced for m = h*Wp + w with h in [0,H), w in [0,Wp); the 2 right-most
    columns of each flat row are junk and masked to zero, so a 3x3 (or shifted
    2x2) tap at (a, b) is just the lane-offset slice x[:, m + a*Wp + b].
    The BN1 activation is re-embedded in the same padded layout (zero ring via
    lane concatenation, junk columns already zero), which is exactly the pad=1
    input the ConvTranspose sub-pixel decomposition needs.
    """
    Wp = W + 2
    M = H * Wp                    # flat per-image output domain (2 junk cols/row)
    Lp = (H + 3) * Wp             # flat zero-padded per-image domain
    head = Wp + 1                 # zero ring before the first interior element
    tail = Lp - head - M          # zero ring after the last one (= 2*Wp - 1)
    deltas = [a * Wp + b for a in range(3) for b in range(3)]   # 9 tap offsets
    eps = 1e-5
    cnt1 = float(N * H * W)
    cnt2 = float(N * 4 * H * W)   # == N * (2H) * (2W)
    f32 = jnp.float32

    def kernel(x_ref, w1_ref, b1_ref, g1_ref, be1_ref,
               w2_ref, b2_ref, g2_ref, be2_ref, cmask_ref, o_ref):
        # x_ref:   (N, Cin, Lp)        w1_ref: (Cmid, 9*Cin)   b1/g1/be1: (Cmid, 1)
        # w2_ref:  (4*Cout, 9*Cmid)    b2_ref: (4*Cout, 1)     g2/be2:    (Cout, 1)
        # cmask:   (1, N*M)            o_ref:  (4*Cout, N*M)
        cm = cmask_ref[...]

        # ---- Conv2d(3x3, pad=1) + bias + ReLU: one stacked MXU dot -------------
        cols = []
        for n in range(N):                       # unrolled; N is small & static
            xi = x_ref[n]                        # (Cin, Lp)
            cols.append(jnp.concatenate([xi[:, d:d + M] for d in deltas], axis=0))
        xs = jnp.concatenate(cols, axis=1)       # (9*Cin, N*M)
        h1 = jnp.dot(w1_ref[...], xs, preferred_element_type=f32) + b1_ref[...]
        h1 = jnp.maximum(h1, 0.0) * cm           # (Cmid, N*M), junk cols zeroed

        # ---- BatchNorm1 (training mode, batch statistics), fully on-chip -------
        s1 = jnp.sum(h1, axis=1, keepdims=True)
        q1 = jnp.sum(h1 * h1, axis=1, keepdims=True)
        mean1 = s1 * (1.0 / cnt1)
        var1 = jnp.maximum(q1 * (1.0 / cnt1) - mean1 * mean1, 0.0)
        a1 = g1_ref[...] * jax.lax.rsqrt(var1 + eps)
        c1 = be1_ref[...] - mean1 * a1
        xa = (h1 * a1 + c1) * cm                 # BN1 output, junk cols stay zero

        # ---- ConvTranspose2d(4, s=2, p=1): 4 sub-pixel phases, one stacked dot --
        # out[co, 2u+ry, 2v+rx] = sum_{ci,dh,dw} W[ci,co,3-ry-2dh,3-rx-2dw]
        #                                        * xa_pad[ci, u+ry+dh, v+rx+dw]
        # Only 9 distinct shifts (a,b) = (ry+dh, rx+dw) exist; build each once.
        zh = jnp.zeros((Cmid, head), f32)
        zt = jnp.zeros((Cmid, tail), f32)
        cols2 = []
        for n in range(N):
            pad_n = jnp.concatenate(             # (Cmid, Lp): zero ring + interior
                [zh, xa[:, n * M:(n + 1) * M], zt], axis=1)
            cols2.append(jnp.concatenate([pad_n[:, d:d + M] for d in deltas],
                                         axis=0))
        xs2 = jnp.concatenate(cols2, axis=1)     # (9*Cmid, N*M)
        h2 = jnp.dot(w2_ref[...], xs2, preferred_element_type=f32) + b2_ref[...]
        h2 = jnp.maximum(h2, 0.0) * cm           # (4*Cout, N*M)

        # ---- BatchNorm2: fold the 4 phase row-groups per channel ---------------
        s2p = jnp.sum(h2, axis=1, keepdims=True)            # (4*Cout, 1)
        q2p = jnp.sum(h2 * h2, axis=1, keepdims=True)
        s2 = (s2p[0:Cout] + s2p[Cout:2 * Cout]
              + s2p[2 * Cout:3 * Cout] + s2p[3 * Cout:4 * Cout])
        q2 = (q2p[0:Cout] + q2p[Cout:2 * Cout]
              + q2p[2 * Cout:3 * Cout] + q2p[3 * Cout:4 * Cout])
        mean2 = s2 * (1.0 / cnt2)
        var2 = jnp.maximum(q2 * (1.0 / cnt2) - mean2 * mean2, 0.0)
        a2 = g2_ref[...] * jax.lax.rsqrt(var2 + eps)
        c2 = be2_ref[...] - mean2 * a2
        a2s = jnp.concatenate([a2, a2, a2, a2], axis=0)     # (4*Cout, 1)
        c2s = jnp.concatenate([c2, c2, c2, c2], axis=0)

        # One lane-dense output store (full last dim = N*M).
        o_ref[...] = h2 * a2s + c2s

    return kernel


# --------------------------------------------------------------------------
# Forward pass wrapper
# --------------------------------------------------------------------------

@jax.jit
def decoder_res18_forward(x_nchw, params):
    """decoder_Res18 forward (NCHW in / NCHW out, training-mode BatchNorm)."""
    f32 = jnp.float32
    x = x_nchw.astype(f32)
    N, Cin, H, W = x.shape
    Cmid = params["w1s"].shape[0]
    Cout = params["g2"].shape[0]
    Wp = W + 2
    M = H * Wp
    Lp = (H + 3) * Wp

    # Whole-batch VMEM footprint (inputs + stacked slabs + activations + output).
    vmem_need = 4 * (N * Cin * Lp + 9 * Cmid * Cin + 4 * Cout * 9 * Cmid
                     + (9 * Cin + Cmid + 9 * Cmid + 2 * 4 * Cout + 1) * N * M
                     + Cmid * Lp)
    if vmem_need > (24 << 20):
        # TODO(synk): add a spatially tiled multi-pallas_call fallback (per-image /
        # row-block grid with on-chip stat partials) for shapes that exceed VMEM
        # residency (v7x has only 64 MiB per TensorCore).
        raise NotImplementedError(
            "decoder_res18_forward: fused whole-batch kernel assumes VMEM residency")
    limit = int(min(max(4 * vmem_need, 8 << 20), 32 << 20))

    # Zero-padded flat input (1 top / 2 bottom / 1 left / 1 right).  Tiny XLA pad
    # fused with the f32 cast; folding it into the kernel would need per-row copies
    # and is not worth it at these sizes.
    xpad = jnp.pad(x, ((0, 0), (0, 0), (1, 2), (1, 1))).reshape(N, Cin, Lp)

    # Mask of the 2 junk columns per flat row, pre-tiled over the batch lanes
    # (lane index = n*M + u*Wp + v, and M is a multiple of Wp).
    cmask = ((jnp.arange(N * M, dtype=jnp.int32) % Wp) < W).astype(f32)
    cmask = cmask.reshape(1, N * M)

    out = pl.pallas_call(
        _make_fused_kernel(N, Cin, Cmid, Cout, H, W),
        out_shape=jax.ShapeDtypeStruct((4 * Cout, N * M), f32),
        compiler_params=pltpu.CompilerParams(vmem_limit_bytes=limit),
    )(xpad, params["w1s"], params["b1"], params["g1"], params["be1"],
      params["w2s"], params["b2s"], params["g2"], params["be2"], cmask)

    # Interleave the 4 sub-pixel phases -> (N, Cout, 2H, 2W).  Single XLA copy;
    # BN2 is already applied in-kernel, so no extra elementwise/normalize pass.
    y = out.reshape(2, 2, Cout, N, H, Wp)[..., :W]          # (ry, rx, co, n, u, v)
    y = jnp.transpose(y, (3, 2, 4, 0, 5, 1)).reshape(N, Cout, 2 * H, 2 * W)
    return y


# --------------------------------------------------------------------------
# Parameters: PyTorch layouts -> kernel layouts
# --------------------------------------------------------------------------

def init_torch_params(key, inC, MiddleC, outC):
    ks = jax.random.split(key, 8)
    return dict(
        w1_t=0.1 * jax.random.normal(ks[0], (MiddleC, inC, 3, 3), jnp.float32),
        b1=0.1 * jax.random.normal(ks[1], (MiddleC,), jnp.float32),
        w2_t=0.1 * jax.random.normal(ks[2], (MiddleC, outC, 4, 4), jnp.float32),
        b2=0.1 * jax.random.normal(ks[3], (outC,), jnp.float32),
        g1=1.0 + 0.1 * jax.random.normal(ks[4], (MiddleC,), jnp.float32),
        be1=0.1 * jax.random.normal(ks[5], (MiddleC,), jnp.float32),
        g2=1.0 + 0.1 * jax.random.normal(ks[6], (outC,), jnp.float32),
        be2=0.1 * jax.random.normal(ks[7], (outC,), jnp.float32),
    )


def prepare_kernel_params(tp):
    Cmid, Cin = tp["w1_t"].shape[:2]
    Cout = tp["w2_t"].shape[1]
    # Conv1 stacked weight: column index t*Cin + ci with t = di*3 + dj,
    # matching the in-kernel tap stacking order.
    w1s = jnp.transpose(tp["w1_t"], (0, 2, 3, 1)).reshape(Cmid, 9 * Cin)
    # ConvTranspose sub-pixel stacked weight over the 9 distinct shifts:
    #   out[co, 2u+ry, 2v+rx] += w2_t[ci, co, 3-ry-2dh, 3-rx-2dw]
    #                            * xa_pad[ci, u+ry+dh, v+rx+dw]
    # row index p*Cout+co (p = 2*ry+rx), column index s*Cmid+ci (s = 3*(ry+dh)+(rx+dw)),
    # zeros where a phase does not use a shift (MXU is idle anyway).
    w2s = jnp.zeros((4 * Cout, 9 * Cmid), jnp.float32)
    for ry in range(2):
        for rx in range(2):
            p = 2 * ry + rx
            for dh in range(2):
                for dw in range(2):
                    s = 3 * (ry + dh) + (rx + dw)
                    blk = tp["w2_t"][:, :, 3 - ry - 2 * dh, 3 - rx - 2 * dw].T
                    w2s = w2s.at[p * Cout:(p + 1) * Cout,
                                 s * Cmid:(s + 1) * Cmid].set(blk)
    return dict(
        w1s=w1s,
        b1=tp["b1"].reshape(Cmid, 1),
        g1=tp["g1"].reshape(Cmid, 1),
        be1=tp["be1"].reshape(Cmid, 1),
        w2s=w2s,
        b2s=jnp.tile(tp["b2"].reshape(Cout, 1), (4, 1)),
        g2=tp["g2"].reshape(Cout, 1),
        be2=tp["be2"].reshape(Cout, 1),
    )


# --------------------------------------------------------------------------
# Pure-JAX reference (for numerical validation)
# --------------------------------------------------------------------------

def _bn_train(x, gamma, beta, eps=1e-5):
    mean = jnp.mean(x, axis=(0, 2, 3), keepdims=True)
    var = jnp.mean(jnp.square(x - mean), axis=(0, 2, 3), keepdims=True)
    return ((x - mean) * jax.lax.rsqrt(var + eps)
            * gamma[None, :, None, None] + beta[None, :, None, None])


def reference_forward(x, tp):
    hi = jax.lax.Precision.HIGHEST
    h = jax.lax.conv_general_dilated(
        x, tp["w1_t"], window_strides=(1, 1), padding=((1, 1), (1, 1)),
        dimension_numbers=("NCHW", "OIHW", "NCHW"), precision=hi)
    h = jnp.maximum(h + tp["b1"][None, :, None, None], 0.0)
    h = _bn_train(h, tp["g1"], tp["be1"])
    # ConvTranspose2d(k=4, s=2, p=1) == conv of the 2x-dilated input, padding 2,
    # with the spatially flipped, in/out-swapped weight.
    w2c = jnp.transpose(jnp.flip(tp["w2_t"], axis=(2, 3)), (1, 0, 2, 3))
    o = jax.lax.conv_general_dilated(
        h, w2c, window_strides=(1, 1), padding=((2, 2), (2, 2)),
        lhs_dilation=(2, 2), dimension_numbers=("NCHW", "OIHW", "NCHW"),
        precision=hi)
    o = jnp.maximum(o + tp["b2"][None, :, None, None], 0.0)
    o = _bn_train(o, tp["g2"], tp["be2"])
    return o


if __name__ == "__main__":
    key = jax.random.PRNGKey(0)
    k_x, k_p = jax.random.split(key)

    batch, inC, MiddleC, outC, H, W = 2, 4, 8, 4, 16, 16
    x = jax.random.normal(k_x, (batch, inC, H, W), jnp.float32)
    torch_params = init_torch_params(k_p, inC, MiddleC, outC)
    kernel_params = prepare_kernel_params(torch_params)

    out = jax.block_until_ready(decoder_res18_forward(x, kernel_params))

    assert out.shape == (batch, outC, 2 * H, 2 * W), out.shape
    assert out.dtype == jnp.float32
    assert bool(jnp.all(jnp.isfinite(out)))

    ref = reference_forward(x, torch_params)
    err = float(jnp.max(jnp.abs(out - ref)))
    assert err < 2e-3, f"max abs err vs pure-JAX reference: {err}"

    print("KERNEL_OK")
</pallas_src>

<mosaic_0001>
module attributes {stable_mosaic.version = 11 : i64} {
  func.func @kernel(%arg0: memref<2x4x342xf32, #tpu.memory_space<vmem>>, %arg1: memref<8x36xf32, #tpu.memory_space<vmem>>, %arg2: memref<8x1xf32, #tpu.memory_space<vmem>>, %arg3: memref<8x1xf32, #tpu.memory_space<vmem>>, %arg4: memref<8x1xf32, #tpu.memory_space<vmem>>, %arg5: memref<16x72xf32, #tpu.memory_space<vmem>>, %arg6: memref<16x1xf32, #tpu.memory_space<vmem>>, %arg7: memref<4x1xf32, #tpu.memory_space<vmem>>, %arg8: memref<4x1xf32, #tpu.memory_space<vmem>>, %arg9: memref<1x576xf32, #tpu.memory_space<vmem>>, %arg10: memref<16x576xf32, #tpu.memory_space<vmem>>) attributes {dimension_semantics = [], scalar_prefetch = 0 : i64, scratch_operands = 0 : i64, tpu.core_type = #tpu.core_type<tc>} {
    %c0 = arith.constant 0 : index
    %c0_0 = arith.constant 0 : index
    %0 = vector.load %arg9[%c0, %c0_0] : memref<1x576xf32, #tpu.memory_space<vmem>>, vector<1x576xf32>
    %c0_1 = arith.constant 0 : index
    %c0_2 = arith.constant 0 : index
    %c0_3 = arith.constant 0 : index
    %1 = vector.load %arg0[%c0_1, %c0_2, %c0_3] : memref<2x4x342xf32, #tpu.memory_space<vmem>>, vector<1x4x342xf32>
    %2 = vector.shape_cast %1 : vector<1x4x342xf32> to vector<4x342xf32>
    %3 = vector.extract_strided_slice %2 {offsets = [0, 0], sizes = [4, 288], strides = [1, 1]} : vector<4x342xf32> to vector<4x288xf32>
    %4 = vector.extract_strided_slice %2 {offsets = [0, 1], sizes = [4, 288], strides = [1, 1]} : vector<4x342xf32> to vector<4x288xf32>
    %5 = vector.extract_strided_slice %2 {offsets = [0, 2], sizes = [4, 288], strides = [1, 1]} : vector<4x342xf32> to vector<4x288xf32>
    %6 = vector.extract_strided_slice %2 {offsets = [0, 18], sizes = [4, 288], strides = [1, 1]} : vector<4x342xf32> to vector<4x288xf32>
    %7 = vector.extract_strided_slice %2 {offsets = [0, 19], sizes = [4, 288], strides = [1, 1]} : vector<4x342xf32> to vector<4x288xf32>
    %8 = vector.extract_strided_slice %2 {offsets = [0, 20], sizes = [4, 288], strides = [1, 1]} : vector<4x342xf32> to vector<4x288xf32>
    %9 = vector.extract_strided_slice %2 {offsets = [0, 36], sizes = [4, 288], strides = [1, 1]} : vector<4x342xf32> to vector<4x288xf32>
    %10 = vector.extract_strided_slice %2 {offsets = [0, 37], sizes = [4, 288], strides = [1, 1]} : vector<4x342xf32> to vector<4x288xf32>
    %11 = vector.extract_strided_slice %2 {offsets = [0, 38], sizes = [4, 288], strides = [1, 1]} : vector<4x342xf32> to vector<4x288xf32>
    %12 = tpu.concatenate %3, %4, %5, %6, %7, %8, %9, %10, %11 in 0 : vector<4x288xf32>, vector<4x288xf32>, vector<4x288xf32>, vector<4x288xf32>, vector<4x288xf32>, vector<4x288xf32>, vector<4x288xf32>, vector<4x288xf32>, vector<4x288xf32> -> vector<36x288xf32>
    %c1 = arith.constant 1 : index
    %c0_4 = arith.constant 0 : index
    %c0_5 = arith.constant 0 : index
    %13 = vector.load %arg0[%c1, %c0_4, %c0_5] : memref<2x4x342xf32, #tpu.memory_space<vmem>>, vector<1x4x342xf32>
    %14 = vector.shape_cast %13 : vector<1x4x342xf32> to vector<4x342xf32>
    %15 = vector.extract_strided_slice %14 {offsets = [0, 0], sizes = [4, 288], strides = [1, 1]} : vector<4x342xf32> to vector<4x288xf32>
    %16 = vector.extract_strided_slice %14 {offsets = [0, 1], sizes = [4, 288], strides = [1, 1]} : vector<4x342xf32> to vector<4x288xf32>
    %17 = vector.extract_strided_slice %14 {offsets = [0, 2], sizes = [4, 288], strides = [1, 1]} : vector<4x342xf32> to vector<4x288xf32>
    %18 = vector.extract_strided_slice %14 {offsets = [0, 18], sizes = [4, 288], strides = [1, 1]} : vector<4x342xf32> to vector<4x288xf32>
    %19 = vector.extract_strided_slice %14 {offsets = [0, 19], sizes = [4, 288], strides = [1, 1]} : vector<4x342xf32> to vector<4x288xf32>
    %20 = vector.extract_strided_slice %14 {offsets = [0, 20], sizes = [4, 288], strides = [1, 1]} : vector<4x342xf32> to vector<4x288xf32>
    %21 = vector.extract_strided_slice %14 {offsets = [0, 36], sizes = [4, 288], strides = [1, 1]} : vector<4x342xf32> to vector<4x288xf32>
    %22 = vector.extract_strided_slice %14 {offsets = [0, 37], sizes = [4, 288], strides = [1, 1]} : vector<4x342xf32> to vector<4x288xf32>
    %23 = vector.extract_strided_slice %14 {offsets = [0, 38], sizes = [4, 288], strides = [1, 1]} : vector<4x342xf32> to vector<4x288xf32>
    %24 = tpu.concatenate %15, %16, %17, %18, %19, %20, %21, %22, %23 in 0 : vector<4x288xf32>, vector<4x288xf32>, vector<4x288xf32>, vector<4x288xf32>, vector<4x288xf32>, vector<4x288xf32>, vector<4x288xf32>, vector<4x288xf32>, vector<4x288xf32> -> vector<36x288xf32>
    %25 = tpu.concatenate %12, %24 in 1 : vector<36x288xf32>, vector<36x288xf32> -> vector<36x576xf32>
    %c0_6 = arith.constant 0 : index
    %c0_7 = arith.constant 0 : index
    %26 = vector.load %arg1[%c0_6, %c0_7] : memref<8x36xf32, #tpu.memory_space<vmem>>, vector<8x36xf32>
    %cst = arith.constant dense<0.000000e+00> : vector<8x576xf32>
    %27 = tpu.matmul %26, %25, %cst {dimension_numbers = #tpu.dot_dimension_numbers<[1], [0], [0], [1], [0, 0, 1, 1], [], []>} : vector<8x36xf32>, vector<36x576xf32>, vector<8x576xf32> -> vector<8x576xf32>
    %c0_8 = arith.constant 0 : index
    %c0_9 = arith.constant 0 : index
    %28 = vector.load %arg2[%c0_8, %c0_9] : memref<8x1xf32, #tpu.memory_space<vmem>>, vector<8x1xf32>
    %29 = vector.broadcast %28 : vector<8x1xf32> to vector<8x576xf32>
    %30 = arith.addf %27, %29 : vector<8x576xf32>
    %cst_10 = arith.constant 0.000000e+00 : f32
    %31 = vector.broadcast %cst_10 : f32 to vector<8x576xf32>
    %32 = arith.maximumf %30, %31 : vector<8x576xf32>
    %33 = vector.broadcast %0 : vector<1x576xf32> to vector<8x576xf32>
    %34 = arith.mulf %32, %33 : vector<8x576xf32>
    %cst_11 = arith.constant dense<0.000000e+00> : vector<8xf32>
    %35 = vector.multi_reduction <add>, %34, %cst_11 [1] : vector<8x576xf32> to vector<8xf32>
    %36 = vector.shape_cast %35 : vector<8xf32> to vector<8x1xf32>
    %37 = arith.mulf %34, %34 : vector<8x576xf32>
    %cst_12 = arith.constant dense<0.000000e+00> : vector<8xf32>
    %38 = vector.multi_reduction <add>, %37, %cst_12 [1] : vector<8x576xf32> to vector<8xf32>
    %39 = vector.shape_cast %38 : vector<8xf32> to vector<8x1xf32>
    %cst_13 = arith.constant 0.001953125 : f32
    %40 = vector.broadcast %cst_13 : f32 to vector<8x1xf32>
    %41 = arith.mulf %36, %40 : vector<8x1xf32>
    %cst_14 = arith.constant 0.001953125 : f32
    %42 = vector.broadcast %cst_14 : f32 to vector<8x1xf32>
    %43 = arith.mulf %39, %42 : vector<8x1xf32>
    %44 = arith.mulf %41, %41 : vector<8x1xf32>
    %45 = arith.subf %43, %44 : vector<8x1xf32>
    %cst_15 = arith.constant 0.000000e+00 : f32
    %46 = vector.broadcast %cst_15 : f32 to vector<8x1xf32>
    %47 = arith.maximumf %45, %46 : vector<8x1xf32>
    %c0_16 = arith.constant 0 : index
    %c0_17 = arith.constant 0 : index
    %48 = vector.load %arg3[%c0_16, %c0_17] : memref<8x1xf32, #tpu.memory_space<vmem>>, vector<8x1xf32>
    %cst_18 = arith.constant 9.99999974E-6 : f32
    %49 = vector.broadcast %cst_18 : f32 to vector<8x1xf32>
    %50 = arith.addf %47, %49 : vector<8x1xf32>
    %51 = math.rsqrt %50 : vector<8x1xf32>
    %52 = arith.mulf %48, %51 : vector<8x1xf32>
    %c0_19 = arith.constant 0 : index
    %c0_20 = arith.constant 0 : index
    %53 = vector.load %arg4[%c0_19, %c0_20] : memref<8x1xf32, #tpu.memory_space<vmem>>, vector<8x1xf32>
    %54 = arith.mulf %41, %52 : vector<8x1xf32>
    %55 = arith.subf %53, %54 : vector<8x1xf32>
    %56 = vector.broadcast %52 : vector<8x1xf32> to vector<8x576xf32>
    %57 = arith.mulf %34, %56 : vector<8x576xf32>
    %58 = vector.broadcast %55 : vector<8x1xf32> to vector<8x576xf32>
    %59 = arith.addf %57, %58 : vector<8x576xf32>
    %60 = vector.broadcast %0 : vector<1x576xf32> to vector<8x576xf32>
    %61 = arith.mulf %59, %60 : vector<8x576xf32>
    %cst_21 = arith.constant 0.000000e+00 : f32
    %62 = vector.broadcast %cst_21 : f32 to vector<8x19xf32>
    %cst_22 = arith.constant 0.000000e+00 : f32
    %63 = vector.broadcast %cst_22 : f32 to vector<8x35xf32>
    %64 = vector.extract_strided_slice %61 {offsets = [0, 0], sizes = [8, 288], strides = [1, 1]} : vector<8x576xf32> to vector<8x288xf32>
    %65 = tpu.concatenate %62, %64, %63 in 1 : vector<8x19xf32>, vector<8x288xf32>, vector<8x35xf32> -> vector<8x342xf32>
    %66 = vector.extract_strided_slice %65 {offsets = [0, 0], sizes = [8, 288], strides = [1, 1]} : vector<8x342xf32> to vector<8x288xf32>
    %67 = vector.extract_strided_slice %65 {offsets = [0, 1], sizes = [8, 288], strides = [1, 1]} : vector<8x342xf32> to vector<8x288xf32>
    %68 = vector.extract_strided_slice %65 {offsets = [0, 2], sizes = [8, 288], strides = [1, 1]} : vector<8x342xf32> to vector<8x288xf32>
    %69 = vector.extract_strided_slice %65 {offsets = [0, 18], sizes = [8, 288], strides = [1, 1]} : vector<8x342xf32> to vector<8x288xf32>
    %70 = vector.extract_strided_slice %65 {offsets = [0, 19], sizes = [8, 288], strides = [1, 1]} : vector<8x342xf32> to vector<8x288xf32>
    %71 = vector.extract_strided_slice %65 {offsets = [0, 20], sizes = [8, 288], strides = [1, 1]} : vector<8x342xf32> to vector<8x288xf32>
    %72 = vector.extract_strided_slice %65 {offsets = [0, 36], sizes = [8, 288], strides = [1, 1]} : vector<8x342xf32> to vector<8x288xf32>
    %73 = vector.extract_strided_slice %65 {offsets = [0, 37], sizes = [8, 288], strides = [1, 1]} : vector<8x342xf32> to vector<8x288xf32>
    %74 = vector.extract_strided_slice %65 {offsets = [0, 38], sizes = [8, 288], strides = [1, 1]} : vector<8x342xf32> to vector<8x288xf32>
    %75 = tpu.concatenate %66, %67, %68, %69, %70, %71, %72, %73, %74 in 0 : vector<8x288xf32>, vector<8x288xf32>, vector<8x288xf32>, vector<8x288xf32>, vector<8x288xf32>, vector<8x288xf32>, vector<8x288xf32>, vector<8x288xf32>, vector<8x288xf32> -> vector<72x288xf32>
    %76 = vector.extract_strided_slice %61 {offsets = [0, 288], sizes = [8, 288], strides = [1, 1]} : vector<8x576xf32> to vector<8x288xf32>
    %77 = tpu.concatenate %62, %76, %63 in 1 : vector<8x19xf32>, vector<8x288xf32>, vector<8x35xf32> -> vector<8x342xf32>
    %78 = vector.extract_strided_slice %77 {offsets = [0, 0], sizes = [8, 288], strides = [1, 1]} : vector<8x342xf32> to vector<8x288xf32>
    %79 = vector.extract_strided_slice %77 {offsets = [0, 1], sizes = [8, 288], strides = [1, 1]} : vector<8x342xf32> to vector<8x288xf32>
    %80 = vector.extract_strided_slice %77 {offsets = [0, 2], sizes = [8, 288], strides = [1, 1]} : vector<8x342xf32> to vector<8x288xf32>
    %81 = vector.extract_strided_slice %77 {offsets = [0, 18], sizes = [8, 288], strides = [1, 1]} : vector<8x342xf32> to vector<8x288xf32>
    %82 = vector.extract_strided_slice %77 {offsets = [0, 19], sizes = [8, 288], strides = [1, 1]} : vector<8x342xf32> to vector<8x288xf32>
    %83 = vector.extract_strided_slice %77 {offsets = [0, 20], sizes = [8, 288], strides = [1, 1]} : vector<8x342xf32> to vector<8x288xf32>
    %84 = vector.extract_strided_slice %77 {offsets = [0, 36], sizes = [8, 288], strides = [1, 1]} : vector<8x342xf32> to vector<8x288xf32>
    %85 = vector.extract_strided_slice %77 {offsets = [0, 37], sizes = [8, 288], strides = [1, 1]} : vector<8x342xf32> to vector<8x288xf32>
    %86 = vector.extract_strided_slice %77 {offsets = [0, 38], sizes = [8, 288], strides = [1, 1]} : vector<8x342xf32> to vector<8x288xf32>
    %87 = tpu.concatenate %78, %79, %80, %81, %82, %83, %84, %85, %86 in 0 : vector<8x288xf32>, vector<8x288xf32>, vector<8x288xf32>, vector<8x288xf32>, vector<8x288xf32>, vector<8x288xf32>, vector<8x288xf32>, vector<8x288xf32>, vector<8x288xf32> -> vector<72x288xf32>
    %88 = tpu.concatenate %75, %87 in 1 : vector<72x288xf32>, vector<72x288xf32> -> vector<72x576xf32>
    %c0_23 = arith.constant 0 : index
    %c0_24 = arith.constant 0 : index
    %89 = vector.load %arg5[%c0_23, %c0_24] : memref<16x72xf32, #tpu.memory_space<vmem>>, vector<16x72xf32>
    %cst_25 = arith.constant dense<0.000000e+00> : vector<16x576xf32>
    %90 = tpu.matmul %89, %88, %cst_25 {dimension_numbers = #tpu.dot_dimension_numbers<[1], [0], [0], [1], [0, 0, 1, 1], [], []>} : vector<16x72xf32>, vector<72x576xf32>, vector<16x576xf32> -> vector<16x576xf32>
    %c0_26 = arith.constant 0 : index
    %c0_27 = arith.constant 0 : index
    %91 = vector.load %arg6[%c0_26, %c0_27] : memref<16x1xf32, #tpu.memory_space<vmem>>, vector<16x1xf32>
    %92 = vector.broadcast %91 : vector<16x1xf32> to vector<16x576xf32>
    %93 = arith.addf %90, %92 : vector<16x576xf32>
    %cst_28 = arith.constant 0.000000e+00 : f32
    %94 = vector.broadcast %cst_28 : f32 to vector<16x576xf32>
    %95 = arith.maximumf %93, %94 : vector<16x576xf32>
    %96 = vector.broadcast %0 : vector<1x576xf32> to vector<16x576xf32>
    %97 = arith.mulf %95, %96 : vector<16x576xf32>
    %cst_29 = arith.constant dense<0.000000e+00> : vector<16xf32>
    %98 = vector.multi_reduction <add>, %97, %cst_29 [1] : vector<16x576xf32> to vector<16xf32>
    %99 = vector.shape_cast %98 : vector<16xf32> to vector<16x1xf32>
    %100 = arith.mulf %97, %97 : vector<16x576xf32>
    %cst_30 = arith.constant dense<0.000000e+00> : vector<16xf32>
    %101 = vector.multi_reduction <add>, %100, %cst_30 [1] : vector<16x576xf32> to vector<16xf32>
    %102 = vector.shape_cast %101 : vector<16xf32> to vector<16x1xf32>
    %103 = vector.extract_strided_slice %99 {offsets = [0, 0], sizes = [4, 1], strides = [1, 1]} : vector<16x1xf32> to vector<4x1xf32>
    %104 = vector.extract_strided_slice %99 {offsets = [4, 0], sizes = [4, 1], strides = [1, 1]} : vector<16x1xf32> to vector<4x1xf32>
    %105 = arith.addf %103, %104 : vector<4x1xf32>
    %106 = vector.extract_strided_slice %99 {offsets = [8, 0], sizes = [4, 1], strides = [1, 1]} : vector<16x1xf32> to vector<4x1xf32>
    %107 = arith.addf %105, %106 : vector<4x1xf32>
    %108 = vector.extract_strided_slice %99 {offsets = [12, 0], sizes = [4, 1], strides = [1, 1]} : vector<16x1xf32> to vector<4x1xf32>
    %109 = arith.addf %107, %108 : vector<4x1xf32>
    %110 = vector.extract_strided_slice %102 {offsets = [0, 0], sizes = [4, 1], strides = [1, 1]} : vector<16x1xf32> to vector<4x1xf32>
    %111 = vector.extract_strided_slice %102 {offsets = [4, 0], sizes = [4, 1], strides = [1, 1]} : vector<16x1xf32> to vector<4x1xf32>
    %112 = arith.addf %110, %111 : vector<4x1xf32>
    %113 = vector.extract_strided_slice %102 {offsets = [8, 0], sizes = [4, 1], strides = [1, 1]} : vector<16x1xf32> to vector<4x1xf32>
    %114 = arith.addf %112, %113 : vector<4x1xf32>
    %115 = vector.extract_strided_slice %102 {offsets = [12, 0], sizes = [4, 1], strides = [1, 1]} : vector<16x1xf32> to vector<4x1xf32>
    %116 = arith.addf %114, %115 : vector<4x1xf32>
    %cst_31 = arith.constant 4.8828125E-4 : f32
    %117 = vector.broadcast %cst_31 : f32 to vector<4x1xf32>
    %118 = arith.mulf %109, %117 : vector<4x1xf32>
    %cst_32 = arith.constant 4.8828125E-4 : f32
    %119 = vector.broadcast %cst_32 : f32 to vector<4x1xf32>
    %120 = arith.mulf %116, %119 : vector<4x1xf32>
    %121 = arith.mulf %118, %118 : vector<4x1xf32>
    %122 = arith.subf %120, %121 : vector<4x1xf32>
    %cst_33 = arith.constant 0.000000e+00 : f32
    %123 = vector.broadcast %cst_33 : f32 to vector<4x1xf32>
    %124 = arith.maximumf %122, %123 : vector<4x1xf32>
    %c0_34 = arith.constant 0 : index
    %c0_35 = arith.constant 0 : index
    %125 = vector.load %arg7[%c0_34, %c0_35] : memref<4x1xf32, #tpu.memory_space<vmem>>, vector<4x1xf32>
    %cst_36 = arith.constant 9.99999974E-6 : f32
    %126 = vector.broadcast %cst_36 : f32 to vector<4x1xf32>
    %127 = arith.addf %124, %126 : vector<4x1xf32>
    %128 = math.rsqrt %127 : vector<4x1xf32>
    %129 = arith.mulf %125, %128 : vector<4x1xf32>
    %c0_37 = arith.constant 0 : index
    %c0_38 = arith.constant 0 : index
    %130 = vector.load %arg8[%c0_37, %c0_38] : memref<4x1xf32, #tpu.memory_space<vmem>>, vector<4x1xf32>
    %131 = arith.mulf %118, %129 : vector<4x1xf32>
    %132 = arith.subf %130, %131 : vector<4x1xf32>
    %133 = tpu.concatenate %129, %129, %129, %129 in 0 : vector<4x1xf32>, vector<4x1xf32>, vector<4x1xf32>, vector<4x1xf32> -> vector<16x1xf32>
    %134 = tpu.concatenate %132, %132, %132, %132 in 0 : vector<4x1xf32>, vector<4x1xf32>, vector<4x1xf32>, vector<4x1xf32> -> vector<16x1xf32>
    %135 = vector.broadcast %133 : vector<16x1xf32> to vector<16x576xf32>
    %136 = arith.mulf %97, %135 : vector<16x576xf32>
    %137 = vector.broadcast %134 : vector<16x1xf32> to vector<16x576xf32>
    %138 = arith.addf %136, %137 : vector<16x576xf32>
    %c0_39 = arith.constant 0 : index
    %c0_40 = arith.constant 0 : index
    %139 = vector.load %arg10[%c0_39, %c0_40] : memref<16x576xf32, #tpu.memory_space<vmem>>, vector<16x576xf32>
    tpu.vector_store %arg10[%c0_39, %c0_40], %138 {strides = array<i32>} : memref<16x576xf32, #tpu.memory_space<vmem>>, vector<16x576xf32>,
    return
  }
}

</mosaic_0001>

<bundles_post_ra>
// kernel: decoder_res18_forward.1
= control target key start
LH: loop header
LB: loop body
LE: loop exit
PB: predicated region body
PF: predicated region fallthrough
CT: control target
= control target key end

     0   :  { %s1785_s19 = smov 127   ;;  %s1786_s20 = smov 126   ;;  %vm50_vm0 = vcmask 1039360   ;;  %vm138_vm1 = vcmask 1043456   ;;  %vm74_vm2 = vcmask 900096   ;;  %v1793_v30 = vmov 0.0   ;;  %s2505_s0 = inlined_call_operand.vmem [shape: f32[2,4,342], index: 0, kind: input, shape index: {}]   ;;  %s2506_s2 = inlined_call_operand.vmem [shape: f32[8,1], index: 2, kind: input, shape index: {}]   ;;  %s2507_s1 = inlined_call_operand.vmem [shape: f32[8,36], index: 1, kind: input, shape index: {}]   ;;  %s2508_s9 = inlined_call_operand.vmem [shape: f32[1,576], index: 9, kind: input, shape index: {}]   ;;  %s2509_s3 = inlined_call_operand.vmem [shape: f32[8,1], index: 3, kind: input, shape index: {}]   ;;  %s2510_s4 = inlined_call_operand.vmem [shape: f32[8,1], index: 4, kind: input, shape index: {}]   ;;  %s2511_s6 = inlined_call_operand.vmem [shape: f32[16,1], index: 6, kind: input, shape index: {}]   ;;  %s2512_s5 = inlined_call_operand.vmem [shape: f32[16,72], index: 5, kind: input, shape index: {}]   ;;  %s2513_s7 = inlined_call_operand.vmem [shape: f32[4,1], index: 7, kind: input, shape index: {}]   ;;  %s2514_s8 = inlined_call_operand.vmem [shape: f32[4,1], index: 8, kind: input, shape index: {}]   ;;  %s2515_s10 = inlined_call_operand.vmem [shape: f32[16,576], index: 10, kind: output, shape index: {}]  }
   0x1   :  { %v1859_v0 = vld [vmem:[%s2505_s0 + $0xc] sm:$0xff]  ;;  %v1864_v1 = vld [vmem:[%s2505_s0] sm:$0xff]  ;;  %v1869_v2 = vld [vmem:[%s2505_s0 + $0x14] sm:$0xf]  ;;  %s1787_s21 = smov 110   ;;  %s1788_s22 = smov 109   ;;  %414 = vmatprep.mubr.f32.mxu0 %v1793_v30  ;;  %485 = vmatprep.mubr.f32.mxu1 %v1793_v30 }
   0x2   :  { %v158_v3 = vcombine.low %v1859_v0, %v1859_v0  ;;  %v1875_v4 = vcombine.high %v1859_v0, %v1859_v0  ;;  %v159_v5 = vcombine.low %v1869_v2, %v1869_v2  ;;  %v1881_v6 = vcombine.high %v1864_v1, %v1864_v1  ;;  %s1789_s23 = smov 108   ;;  %s1790_s24 = smov 92   ;;  %v1906_v11 = vld [vmem:[%s2505_s0 + $0x8] sm:$0xf] }
   0x3   :  { %s1791_s27 = smov 91   ;;  %v42_v12 = vcombine.low %v1864_v1, %v1864_v1  ;;  %v43_v13 = vcombine.low %v1906_v11, %v1906_v11  ;;  %s1792_s28 = smov 90   ;;  %v1548_v15 = vpack.i.bf16 %v1864_v1, %v1906_v11  ;;  %vm62_vm3 = vcmask 1031168  }
   0x4   :  { %v1498_v7 = vpack.i.bf16 %v1859_v0, %v158_v3  ;;  %v1508_v8 = vpack.i.bf16 %v1875_v4, %v1859_v0  ;;  %v1503_v9 = vpack.i.bf16 %v1864_v1, %v159_v5  ;;  %v1513_v10 = vpack.i.bf16 %v1881_v6, %v1869_v2  ;;  %s1794_s0 = smov 32   ;;  %s1798_s16 = smov 115  }
   0x5   :  { %v1543_v14 = vpack.i.bf16 %v42_v12, %v43_v13  ;;  %v1553_v16 = vpack.i.bf16 %v43_v13, %v1864_v1  ;;  %v1558_v17 = vpack.i.bf16 %v1906_v11, %v1881_v6  ;;  %vm86_vm4 = vcmask 891904  }
   0x6   :  { %1499 = vrot.lane.b32.xlu0 %v1498_v7, %s1785_s19  ;;  %1509 = vrot.lane.b32.xlu1 %v1508_v8, %s1786_s20  ;;  %vm98_vm5 = vcmask 883712   ;;  %vm110_vm6 = vcmask 752640   ;;  %vm122_vm7 = vcmask 744448   ;;  %vm134_vm8 = vcmask 736256  }
   0x7   :  { %vm335_vm9 = vcmask 293888   ;;  %vm1797_vm10 = vmmov 0   ;;  %vm299_vm11 = vcmask 261120   ;;  %vm601_vm12 = vcmask 523264  }
   0x8   :  { %vm771_vm13 = vcmask 941056   ;;  %vm664_vm14 = vcmask 154624   ;;  %vm671_vm15 = vcmask 416768  }
   0xa   :  { %1504 = vrot.lane.b32.xlu0 %v1503_v9, %s1785_s19  ;;  %1514 = vrot.lane.b32.xlu1 %v1513_v10, %s1786_s20 }
   0xe   :  { %1519 = vrot.lane.b32.xlu0 %v1498_v7, %s1787_s21  ;;  %186 = vrot.lane.b32.xlu1 %v159_v5, %s1787_s21 }
  0x12   :  { %1524 = vrot.lane.b32.xlu0 %v1508_v8, %s1788_s22  ;;  %197 = vrot.lane.b32.xlu1 %v1869_v2, %s1788_s22 }
  0x16   :  { %1529 = vrot.lane.b32.xlu0 %v1498_v7, %s1789_s23  ;;  %208 = vrot.lane.b32.xlu1 %v159_v5, %s1789_s23 }
  0x1a   :  { %1534 = vrot.lane.b32.xlu0 %v1508_v8, %s1790_s24  ;;  %219 = vrot.lane.b32.xlu1 %v1869_v2, %s1790_s24 }
  0x1e   :  { %1539 = vrot.lane.b32.xlu0 %v1498_v7, %s1791_s27  ;;  %230 = vrot.lane.b32.xlu1 %v159_v5, %s1791_s27 }
  0x22   :  { %237 = vrot.lane.b32.xlu0 %v1859_v0, %s1792_s28  ;;  %239 = vrot.lane.b32.xlu1 %v1875_v4, %s1792_s28 }
  0x26   :  { %241 = vrot.lane.b32.xlu0 %v1869_v2, %s1792_s28  ;;  %1544 = vrot.lane.b32.xlu1 %v1543_v14, %s1785_s19 }
  0x2a   :  { %1549 = vrot.lane.b32.xlu0 %v1548_v15, %s1786_s20  ;;  %1554 = vrot.lane.b32.xlu1 %v1553_v16, %s1787_s21 }
  0x2e   :  { %68 = vrot.lane.b32.xlu0 %v42_v12, %s1787_s21  ;;  %1559 = vrot.lane.b32.xlu1 %v1558_v17, %s1788_s22 }
  0x32   :  { %1569 = vrot.lane.b32.xlu1 %v1558_v17, %s1790_s24  ;;  %1564 = vrot.lane.b32.xlu0 %v1553_v16, %s1789_s23 }
  0x36   :  { %80 = vrot.lane.b32.xlu1 %v1864_v1, %s1788_s22  ;;  %1574 = vrot.lane.b32.xlu0 %v1553_v16, %s1791_s27 }
  0x3a   :  { %104 = vrot.lane.b32.xlu1 %v1864_v1, %s1790_s24  ;;  %92 = vrot.lane.b32.xlu0 %v42_v12, %s1789_s23 }
  0x3e   :  { %130 = vrot.lane.b32.xlu1 %v1881_v6, %s1792_s28  ;;  %116 = vrot.lane.b32.xlu0 %v42_v12, %s1791_s27 }
  0x42   :  { %128 = vrot.lane.b32.xlu1 %v1864_v1, %s1792_s28  ;;  %132 = vrot.lane.b32.xlu0 %v1906_v11, %s1792_s28 }
  0x78   :  { %v1500_v18 = vpop.permute.xlu0 %1499  ;;  %v1510_v19 = vpop.permute.xlu1 %1509 }
  0x79   :  { %v1502_v20 = vunpack.i.h.bf16 %v1500_v18  ;;  %v1501_v21 = vunpack.i.l.bf16 %v1500_v18  ;;  %v1512_v26 = vunpack.i.h.bf16 %v1510_v19  ;;  %v1511_v27 = vunpack.i.l.bf16 %v1510_v19 }
  0x7b   :  { %v166_v24 = vsel %vm50_vm0, %v1501_v21, %v1502_v20  ;;  %v177_v43 = vsel %vm62_vm3, %v1511_v27, %v1512_v26 }
  0x7c   :  { %v1945_v22 = vpop.permute.xlu0 %1504  ;;  %v1947_v23 = vpop.permute.xlu1 %1514  ;;  %v245_v33 = vsel %vm138_vm1, %v1859_v0, %v166_v24  ;;  %v1795_v24 = vmov 0  }
  0x7d   :  { %v1506_v25 = vunpack.i.l.bf16 %v1945_v22  ;;  %v1516_v29 = vunpack.i.l.bf16 %v1947_v23  ;;  %1608 = vset.pattern.permute.xlu1 %v1795_v24  ;;  %1609 = vset.pattern.permute.xlu0 %v1795_v24 }
  0x7f   :  { %v167_v28 = vsel %vm50_vm0, %v1502_v20, %v1506_v25  ;;  %v247_v35 = vsel %vm138_vm1, %v1869_v2, %v1506_v25  ;;  %v178_v44 = vsel %vm62_vm3, %v1512_v26, %v1516_v29 }
  0x80   :  { %v1520_v31 = vpop.permute.xlu0 %1519  ;;  %v187_v32 = vpop.permute.xlu1 %186  ;;  %v246_v34 = vsel %vm138_vm1, %v1875_v4, %v167_v28 }
  0x81   :  { %v1522_v36 = vunpack.i.h.bf16 %v1520_v31  ;;  %v1521_v37 = vunpack.i.l.bf16 %v1520_v31  ;;  %v250_v38 = vsel %vm138_vm1, %v1516_v29, %v187_v32  ;;  %v1583_v39 = vpack.i.bf16 %v246_v34, %v245_v33  ;;  %v329_v33 = vld [vmem:[%s2506_s2] sm:$0xff] }
  0x82   :  { %v1578_v40 = vpack.i.bf16 %v250_v38, %v247_v35  ;;  %v1507_v31 = vunpack.i.h.bf16 %v1945_v22  ;;  %v1517_v34 = vunpack.i.h.bf16 %v1947_v23 }
  0x83   :  { %v188_v41 = vsel %vm74_vm2, %v1521_v37, %v1522_v36  ;;  %v189_v42 = vsel %vm74_vm2, %v1522_v36, %v187_v32  ;;  %1584 = vrot.lane.b32.xlu1 %v1583_v39, %s1794_s0 }
  0x84   :  { %v1525_v45 = vpop.permute.xlu0 %1524  ;;  %v198_v46 = vpop.permute.xlu1 %197  ;;  %1579 = vrot.lane.b32.xlu0 %v1578_v40, %s1794_s0  ;;  %v248_v47 = vsel %vm138_vm1, %v177_v43, %v188_v41  ;;  %v249_v48 = vsel %vm138_vm1, %v178_v44, %v189_v42 }
  0x85   :  { %v1588_v49 = vpack.i.bf16 %v249_v48, %v248_v47  ;;  %v1527_v50 = vunpack.i.h.bf16 %v1525_v45  ;;  %v1526_v51 = vunpack.i.l.bf16 %v1525_v45 }
  0x87   :  { %v199_v56 = vsel %vm86_vm4, %v1526_v51, %v1527_v50  ;;  %v200_v57 = vsel %vm86_vm4, %v1527_v50, %v198_v46 }
  0x88   :  { %v1530_v52 = vpop.permute.xlu0 %1529  ;;  %v209_v53 = vpop.permute.xlu1 %208  ;;  %1589 = vrot.lane.b32.xlu0 %v1588_v49, %s1794_s0 }
  0x89   :  { %v1532_v54 = vunpack.i.h.bf16 %v1530_v52  ;;  %v1531_v55 = vunpack.i.l.bf16 %v1530_v52  ;;  %v253_v7 = vsel %vm138_vm1, %v198_v46, %v209_v53 }
  0x8b   :  { %v210_v58 = vsel %vm98_vm5, %v1531_v55, %v1532_v54  ;;  %v211_v59 = vsel %vm98_vm5, %v1532_v54, %v209_v53 }
  0x8c   :  { %v252_v60 = vsel %vm138_vm1, %v200_v57, %v211_v59  ;;  %v1535_v61 = vpop.permute.xlu0 %1534  ;;  %v220_v62 = vpop.permute.xlu1 %219  ;;  %v251_v63 = vsel %vm138_vm1, %v199_v56, %v210_v58 }
  0x8d   :  { %v1593_v0 = vpack.i.bf16 %v252_v60, %v251_v63  ;;  %v1537_v2 = vunpack.i.h.bf16 %v1535_v61  ;;  %v1536_v3 = vunpack.i.l.bf16 %v1535_v61 }
  0x8f   :  { %1594 = vrot.lane.b32.xlu1 %v1593_v0, %s1794_s0  ;;  %v221_v13 = vsel %vm110_vm6, %v1536_v3, %v1537_v2  ;;  %v222_v14 = vsel %vm110_vm6, %v1537_v2, %v220_v62 }
  0x90   :  { %v1540_v4 = vpop.permute.xlu0 %1539  ;;  %v231_v5 = vpop.permute.xlu1 %230 }
  0x91   :  { %v1542_v8 = vunpack.i.h.bf16 %v1540_v4  ;;  %v1541_v9 = vunpack.i.l.bf16 %v1540_v4  ;;  %v256_v10 = vsel %vm138_vm1, %v220_v62, %v231_v5 }
  0x92   :  { %v1603_v12 = vpack.i.bf16 %v256_v10, %v253_v7 }
  0x93   :  { %v232_v15 = vsel %vm122_vm7, %v1541_v9, %v1542_v8  ;;  %v233_v16 = vsel %vm122_vm7, %v1542_v8, %v231_v5 }
  0x94   :  { %v255_v17 = vsel %vm138_vm1, %v222_v14, %v233_v16  ;;  %v238_v18 = vpop.permute.xlu0 %237  ;;  %1604 = vrot.lane.b32.xlu1 %v1603_v12, %s1794_s0  ;;  %v240_v19 = vpop.permute.xlu1 %239  ;;  %v254_v20 = vsel %vm138_vm1, %v221_v13, %v232_v15 }
  0x95   :  { %v1598_v21 = vpack.i.bf16 %v255_v17, %v254_v20  ;;  %v243_v27 = vsel %vm134_vm8, %v238_v18, %v240_v19 }
  0x97   :  { %1599 = vrot.lane.b32.xlu0 %v1598_v21, %s1794_s0 }
  0x98   :  { %v242_v25 = vpop.permute.xlu0 %241  ;;  %v1988_v26 = vpop.permute.xlu1 %1544 }
  0x99   :  { %v1546_v28 = vunpack.i.l.bf16 %v1988_v26  ;;  %v244_v29 = vsel %vm134_vm8, %v240_v19, %v242_v25  ;;  %v1547_v32 = vunpack.i.h.bf16 %v1988_v26 }
  0x9a   :  { %295 = vrot.lane.b32.xlu1 %v244_v29, %s1794_s0 }
  0x9b   :  { %293 = vrot.lane.b32.xlu0 %v243_v27, %s1794_s0  ;;  %v52_v37 = vsel %vm50_vm0, %v1507_v31, %v1546_v28  ;;  %v51_v43 = vsel %vm50_vm0, %v1547_v32, %v1507_v31  ;;  %v2046_v32 = vld [vmem:[%s2507_s1] sm:$0xff] }
  0x9c   :  { %v1550_v35 = vpop.permute.xlu0 %1549  ;;  %v1555_v36 = vpop.permute.xlu1 %1554  ;;  %v140_v45 = vsel %vm138_vm1, %v1881_v6, %v52_v37  ;;  %v139_v51 = vsel %vm138_vm1, %v1864_v1, %v51_v43 }
  0x9d   :  { %v1552_v38 = vunpack.i.h.bf16 %v1550_v35  ;;  %v1551_v22 = vunpack.i.l.bf16 %v1550_v35  ;;  %v1557_v39 = vunpack.i.h.bf16 %v1555_v36  ;;  %v1556_v40 = vunpack.i.l.bf16 %v1555_v36 }
  0x9e   :  { %332 = vperm.xlu1 %1608, %v329_v33   ;;  %v1796_v33 = vmov 0.0|0.0  }
  0x9f   :  { %297 = vrot.lane.b32.xlu0 %v242_v25, %s1794_s0  ;;  %v64_v41 = vsel %vm62_vm3, %v1517_v34, %v1551_v22  ;;  %v76_v42 = vsel %vm74_vm2, %v1556_v40, %v1557_v39  ;;  %v2009_v23 = vsel %vm138_vm1, %v1551_v22, %v1557_v39  ;;  %v63_v50 = vsel %vm62_vm3, %v1552_v38, %v1517_v34 }
  0xa0   :  { %v69_v44 = vpop.permute.xlu0 %68  ;;  %v143_v46 = vsel %vm138_vm1, %v64_v41, %v76_v42  ;;  %v1560_v47 = vpop.permute.xlu1 %1559  ;;  %v141_v42 = vsel %vm138_vm1, %v1906_v11, %v1546_v28 }
  0xa1   :  { %v75_v48 = vsel %vm74_vm2, %v69_v44, %v1556_v40  ;;  %v1411_v49 = vpack.c.bf16 %v143_v46, %v140_v45  ;;  %v1562_v54 = vunpack.i.h.bf16 %v1560_v47  ;;  %v1561_v55 = vunpack.i.l.bf16 %v1560_v47 }
  0xa2   :  { %v142_v52 = vsel %vm138_vm1, %v63_v50, %v75_v48 }
  0xa3   :  { %1412 = vmatprep.subr.bf16.mxu0 %v1411_v49  ;;  %v1413_v53 = vpack.c.bf16 %v142_v52, %v139_v51  ;;  %v88_v61 = vsel %vm86_vm4, %v1561_v55, %v1562_v54 }
  0xa4   :  { %v1570_v56 = vpop.permute.xlu1 %1569  ;;  %v1565_v57 = vpop.permute.xlu0 %1564 }
  0xa5   :  { %1414 = vmatpush1.bf16.msra.mxu0 %v1413_v53  ;;  %v1572_v6 = vunpack.i.h.bf16 %v1570_v56  ;;  %v1571_v58 = vunpack.i.l.bf16 %v1570_v56  ;;  %v1567_v59 = vunpack.i.h.bf16 %v1565_v57  ;;  %v1566_v60 = vunpack.i.l.bf16 %v1565_v57 }
  0xa7   :  { %v100_v62 = vsel %vm98_vm5, %v1566_v60, %v1567_v59  ;;  %v2022_v63 = vsel %vm138_vm1, %v1562_v54, %v1567_v59  ;;  %v112_v2 = vsel %vm110_vm6, %v1571_v58, %v1572_v6 }
  0xa8   :  { %v81_v1 = vpop.permute.xlu1 %80  ;;  %v1575_v0 = vpop.permute.xlu0 %1574  ;;  %v146_v5 = vsel %vm138_vm1, %v88_v61, %v100_v62 }
  0xa9   :  { %v1577_v3 = vunpack.i.h.bf16 %v1575_v0  ;;  %v1576_v4 = vunpack.i.l.bf16 %v1575_v0  ;;  %v87_v13 = vsel %vm86_vm4, %v81_v1, %v1561_v55 }
  0xab   :  { %v124_v7 = vsel %vm122_vm7, %v1576_v4, %v1577_v3  ;;  %v2028_v8 = vsel %vm138_vm1, %v1572_v6, %v1577_v3 }
  0xac   :  { %v105_v9 = vpop.permute.xlu1 %104  ;;  %v93_v10 = vpop.permute.xlu0 %92  ;;  %v149_v12 = vsel %vm138_vm1, %v112_v2, %v124_v7 }
  0xad   :  { %v99_v14 = vsel %vm98_vm5, %v93_v10, %v1566_v60  ;;  %v1415_v15 = vpack.c.bf16 %v149_v12, %v146_v5  ;;  %v111_v16 = vsel %vm110_vm6, %v105_v9, %v1571_v58  ;;  %v568_v10 = vlaneseq }
  0xae   :  { %v145_v17 = vsel %vm138_vm1, %v87_v13, %v99_v14 }
  0xaf   :  { %1416 = vmatprep.subr.bf16.mxu0 %v1415_v15  ;;  %v569_v12 = vshrl.u32 %v568_v10, 7 }
  0xb0   :  { %v131_v18 = vpop.permute.xlu1 %130  ;;  %v117_v19 = vpop.permute.xlu0 %116 }
  0xb1   :  { %v123_v20 = vsel %vm122_vm7, %v117_v19, %v1576_v4  ;;  %v570_v14 = vsub.s32 0, %v569_v12 }
  0xb2   :  { %v148_v21 = vsel %vm138_vm1, %v111_v16, %v123_v20 }
  0xb3   :  { %v1417_v24 = vpack.c.bf16 %v148_v21, %v145_v17  ;;  %v574_v17 = vsub.s32 1, %v569_v12 }
  0xb4   :  { %v2037_v25 = vpop.permute.xlu0 %132  ;;  %v129_v27 = vpop.permute.xlu1 %128 }
  0xb5   :  { %v136_v29 = vsel %vm134_vm8, %v131_v18, %v2037_v25  ;;  %1418 = vmatpush1.bf16.msra.mxu0 %v1417_v24  ;;  %v135_v31 = vsel %vm134_vm8, %v129_v27, %v131_v18  ;;  %v35_v18 = vld [vmem:[%s2508_s9] sm:$0x1f]  ;;  %v578_v27 = vsub.s32 2, %v569_v12 }
  0xb6   :  { %1344 = vmatprep.subr.msk.mxu0 %vm138_vm1, %v136_v29  ;;  %v2088_v19 = vrot.slane %v35_v18, %v570_v14  ;;  %v2090_v24 = vrot.slane %v35_v18, %v574_v17  ;;  %v582_v29 = vsub.s32 3, %v569_v12 }
  0xb9   :  { %1345 = vmatpush1.msk.msra.mxu0 %vm138_vm1, %v135_v31 }
  0xba   :  { %1427 = vmatprep.subr.bf16.mxu0 %v1796_v33  ;;  %1346 = vmatmul.mubr.msk.f32.vlgmr.msra.gmra.mrb[0].mxu0 %vm335_vm9, %v2046_v32 }
  0xbb   :  { %1387 = vmatprep.mubr.msk.f32.mxu0 %vm1797_vm10, %v1793_v30  ;;  %vm1800_vm10 = vmmov 1  }
  0xf5   :  { %v1585_v34 = vpop.permute.xlu1 %1584 }
  0xf6   :  { %v1580_v35 = vpop.permute.xlu0 %1579  ;;  %v1587_v36 = vunpack.i.h.bf16 %v1585_v34  ;;  %v1586_v37 = vunpack.i.l.bf16 %v1585_v34 }
  0xf7   :  { %v1581_v38 = vunpack.i.l.bf16 %v1580_v35  ;;  %v1582_v39 = vunpack.i.h.bf16 %v1580_v35 }
  0xf8   :  { %v300_v43 = vsel %vm299_vm11, %v1586_v37, %v1587_v36  ;;  %v323_v44 = vsel %vm299_vm11, %v141_v42, %v1586_v37  ;;  %v2102_v42 = vrot.slane %v35_v18, %v582_v29 }
  0xf9   :  { %v301_v45 = vsel %vm299_vm11, %v1587_v36, %v1581_v38 }
  0xfa   :  { %v1590_v22 = vpop.permute.xlu0 %1589 }
  0xfb   :  { %v1592_v40 = vunpack.i.h.bf16 %v1590_v22  ;;  %v1591_v41 = vunpack.i.l.bf16 %v1590_v22  ;;  %v2100_v22 = vrot.slane %v35_v18, %v578_v27 }
  0xfd   :  { %v303_v46 = vsel %vm299_vm11, %v1592_v40, %v1582_v39  ;;  %v302_v47 = vsel %vm299_vm11, %v1591_v41, %v1592_v40  ;;  %v324_v48 = vsel %vm299_vm11, %v2009_v23, %v1591_v41 }
  0xfe   :  { %v1428_v49 = vpack.c.bf16 %v303_v46, %v301_v45  ;;  %v1419_v50 = vpack.c.bf16 %v302_v47, %v300_v43  ;;  %v1421_v51 = vpack.c.bf16 %v324_v48, %v323_v44 }
 0x100   :  { %1420 = vmatprep.subr.bf16.mxu1 %v1419_v50  ;;  %1429 = vmatpush3.bf16.msra.mxu0 %v1428_v49 }
 0x101   :  { %v1595_v26 = vpop.permute.xlu1 %1594  ;;  %1422 = vmatpush1.bf16.msra.mxu1 %v1421_v51  ;;  %1430 = vmatprep.subr.bf16.mxu0 %v1796_v33 }
 0x102   :  { %v1597_v28 = vunpack.i.h.bf16 %v1595_v26  ;;  %v1596_v52 = vunpack.i.l.bf16 %v1595_v26 }
 0x104   :  { %v304_v6 = vsel %vm299_vm11, %v1596_v52, %v1597_v28  ;;  %v325_v23 = vsel %vm299_vm11, %v2022_v63, %v1596_v52 }
 0x106   :  { %v1605_v11 = vpop.permute.xlu1 %1604 }
 0x107   :  { %v1606_v53 = vunpack.i.l.bf16 %v1605_v11  ;;  %v1607_v55 = vunpack.i.h.bf16 %v1605_v11 }
 0x109   :  { %v1600_v54 = vpop.permute.xlu0 %1599  ;;  %v305_v58 = vsel %vm299_vm11, %v1597_v28, %v1606_v53 }
 0x10a   :  { %v1602_v56 = vunpack.i.h.bf16 %v1600_v54  ;;  %v1601_v57 = vunpack.i.l.bf16 %v1600_v54 }
 0x10c   :  { %v307_v59 = vsel %vm299_vm11, %v1602_v56, %v1607_v55  ;;  %v306_v60 = vsel %vm299_vm11, %v1601_v57, %v1602_v56  ;;  %v326_v61 = vsel %vm299_vm11, %v2028_v8, %v1601_v57  ;;  %v296_v1 = vpop.permute.xlu1 %295 }
 0x10d   :  { %v1431_v62 = vpack.c.bf16 %v307_v59, %v305_v58  ;;  %v294_v0 = vpop.permute.xlu0 %293  ;;  %v1423_v2 = vpack.c.bf16 %v306_v60, %v304_v6  ;;  %v1425_v3 = vpack.c.bf16 %v326_v61, %v325_v23 }
 0x10e   :  { %v308_v4 = vsel %vm299_vm11, %v294_v0, %v296_v1  ;;  %v327_v7 = vsel %vm299_vm11, %v2037_v25, %v294_v0  ;;  %v586_v25 = vsub.s32 4, %v569_v12 }
 0x10f   :  { %1424 = vmatprep.subr.bf16.mxu1 %v1423_v2  ;;  %1432 = vmatpush3.bf16.msra.mxu0 %v1431_v62 }
 0x110   :  { %1426 = vmatpush1.bf16.msra.mxu1 %v1425_v3  ;;  %1385 = vmatprep.subr.mxu0 %v1793_v30  ;;  %v2098_v35 = vrot.slane %v35_v18, %v586_v25  ;;  %v623_v3 = vld [vmem:[%s2509_s3] sm:$0xff]  ;;  %s1799_s3 = smov 19  }
 0x111   :  { %v298_v63 = vpop.permute.xlu0 %297  ;;  %1347 = vmatprep.subr.msk.mxu1 %vm138_vm1, %v308_v4 }
 0x112   :  { %v309_v5 = vsel %vm299_vm11, %v296_v1, %v298_v63 }
 0x113   :  { %1386 = vmatpush3.msk.msra.mxu0 %vm138_vm1, %v309_v5  ;;  %v627_v5 = vld [vmem:[%s2510_s4] sm:$0xff] }
 0x114   :  { %1348 = vmatpush1.msk.msra.mxu1 %vm138_vm1, %v327_v7  ;;  %1388 = vmatmul.mubr.msk.f32.vlgmr.msra.gmra.mrb[2].mxu0 %vm335_vm9, %v2046_v32 }
 0x115   :  { %1349 = vmatmul.mubr.msk.f32.vlgmr.msra.gmra.mrb[0].mxu1 %vm335_vm9, %v2046_v32  ;;  %1114 = vmatprep.mubr.f32.mxu0 %v1793_v30  ;;  %vm1352_vm9 = vmneg %vm664_vm14 }
 0x116   :  { %1037 = vmatprep.mubr.f32.mxu1 %v1793_v30 }
 0x11d   :  { %v333_v13 = vpop.permute.xlu1 %332 }
 0x18d   :  { %v416_v8 = vpop.f32.mrb[0].mxu0 }
 0x18e   :  { %v418_v9 = vpop.f32.mrb[1].mxu0  ;;  %v417_v15 = vadd.f32 %v416_v8, %v333_v13 }
 0x18f   :  { %v419_v16 = vadd.f32 %v418_v9, %v333_v13 }
 0x190   :  { %v562_v20 = vmax.f32 %v417_v15, 0.0 }
 0x191   :  { %v563_v21 = vmax.f32 %v419_v16, 0.0 }
 0x192   :  { %v2093_v31 = vmul.f32 %v2088_v19, %v562_v20 }
 0x193   :  { %v2096_v32 = vmul.f32 %v2090_v24, %v563_v21 }
 0x194   :  { %v606_v45 = vmul.f32 %v2093_v31, %v2093_v31 }
 0x195   :  { %v607_v43 = vmul.f32 %v2096_v32, %v2096_v32  ;;  %v598_v49 = vadd.f32 %v2096_v32, %v2093_v31 }
 0x197   :  { %v611_v11 = vadd.f32 %v607_v43, %v606_v45 }
 0x1e7   :  { %v558_v33 = vpop.f32.mrb[2].mxu0 }
 0x1e8   :  { %v559_v34 = vadd.f32 %v558_v33, %v333_v13  ;;  %v487_v36 = vpop.f32.mrb[0].mxu1  ;;  %v1389_v37 = vpop.f32.mrb[3].mxu0 }
 0x1e9   :  { %v488_v38 = vadd.f32 %v487_v36, %v333_v13  ;;  %v489_v39 = vpop.f32.mrb[1].mxu1 }
 0x1ea   :  { %v566_v40 = vmax.f32 %v559_v34, 0.0  ;;  %v490_v41 = vadd.f32 %v489_v39, %v333_v13 }
 0x1eb   :  { %v564_v44 = vmax.f32 %v488_v38, 0.0 }
 0x1ec   :  { %v597_v46 = vmul.f32 %v2098_v35, %v566_v40  ;;  %v565_v47 = vmax.f32 %v490_v41, 0.0 }
 0x1ed   :  { %v595_v48 = vmul.f32 %v2100_v22, %v564_v44 }
 0x1ee   :  { %v596_v50 = vmul.f32 %v2102_v42, %v565_v47  ;;  %v610_v52 = vmul.f32 %v597_v46, %v597_v46  ;;  %v602_v55 = vsel %vm601_vm12, %v597_v46, 0.0 }
 0x1ef   :  { %v599_v51 = vadd.f32 %v598_v49, %v595_v48  ;;  %v608_v26 = vmul.f32 %v595_v48, %v595_v48 }
 0x1f0   :  { %v609_v28 = vmul.f32 %v596_v50, %v596_v50  ;;  %v614_v6 = vsel %vm601_vm12, %v610_v52, 0.0 }
 0x1f1   :  { %v600_v53 = vadd.f32 %v599_v51, %v596_v50  ;;  %v612_v54 = vadd.f32 %v611_v11, %v608_v26 }
 0x1f3   :  { %v603_v56 = vadd.f32 %v602_v55, %v600_v53  ;;  %v613_v57 = vadd.f32 %v612_v54, %v609_v28 }
 0x1f5   :  { %604 = vadd.xlane.f32.xlu0 %v603_v56  ;;  %v615_v23 = vadd.f32 %v614_v6, %v613_v57 }
 0x1f7   :  { %616 = vadd.xlane.f32.xlu1 %v615_v23 }
 0x282   :  { %v605_v58 = vpop.xlane.xlu0 %604 }
 0x283   :  { %v618_v59 = vmul.f32 0.001953125, %v605_v58 }
 0x284   :  { %v617_v60 = vpop.xlane.xlu1 %616 }
 0x285   :  { %v620_v61 = vmul.f32 %v618_v59, %v618_v59  ;;  %v619_v62 = vmul.f32 0.001953125, %v617_v60 }
 0x287   :  { %v621_v1 = vsub.f32 %v619_v62, %v620_v61 }
 0x289   :  { %v622_v0 = vmax.f32 %v621_v1, 0.0 }
 0x28b   :  { %v624_v2 = vadd.f32 1e-05, %v622_v0 }
 0x28d   :  { %1781 = vrsqrt.f32 %v624_v2 }
 0x297   :  { %v1782_v4 = vpop.eup %1781 }
 0x298   :  { %v626_v63 = vmul.f32 %v1782_v4, %v623_v3 }
 0x29a   :  { %632 = vperm.xlu0 %1609, %v626_v63   ;;  %v628_v7 = vmul.f32 %v626_v63, %v618_v59 }
 0x29c   :  { %v629_v8 = vsub.f32 %v627_v5, %v628_v7 }
 0x29e   :  { %642 = vperm.xlu1 %1608, %v629_v8  }
 0x319   :  { %v633_v9 = vpop.permute.xlu0 %632 }
 0x31a   :  { %v637_v10 = vmul.f32 %v633_v9, %v595_v48  ;;  %v638_v14 = vmul.f32 %v633_v9, %v596_v50  ;;  %v639_v17 = vmul.f32 %v633_v9, %v597_v46  ;;  %v636_v21 = vmul.f32 %v633_v9, %v2096_v32 }
 0x31b   :  { %v635_v33 = vmul.f32 %v633_v9, %v2093_v31 }
 0x31d   :  { %v643_v12 = vpop.permute.xlu1 %642 }
 0x31e   :  { %v647_v13 = vadd.f32 %v643_v12, %v637_v10  ;;  %v648_v16 = vadd.f32 %v643_v12, %v638_v14  ;;  %v649_v20 = vadd.f32 %v643_v12, %v639_v17  ;;  %v646_v27 = vadd.f32 %v643_v12, %v636_v21 }
 0x31f   :  { %v645_v34 = vadd.f32 %v643_v12, %v635_v33 }
 0x320   :  { %v652_v15 = vmul.f32 %v647_v13, %v2100_v22  ;;  %v653_v18 = vmul.f32 %v648_v16, %v2102_v42  ;;  %v654_v25 = vmul.f32 %v649_v20, %v2098_v35  ;;  %v651_v29 = vmul.f32 %v646_v27, %v2090_v24 }
 0x321   :  { %v650_v36 = vmul.f32 %v645_v34, %v2088_v19 }
 0x322   :  { %765 = vrot.lane.b32.xlu1 %v652_v15, %s1798_s16 }
 0x326   :  { %767 = vrot.lane.b32.xlu1 %v653_v18, %s1798_s16 }
 0x32a   :  { %769 = vrot.lane.b32.xlu1 %v654_v25, %s1798_s16 }
 0x32e   :  { %660 = vrot.lane.b32.xlu1 %v651_v29, %s1799_s3 }
 0x332   :  { %662 = vrot.lane.b32.xlu1 %v652_v15, %s1799_s3 }
 0x336   :  { %658 = vrot.lane.b32.xlu1 %v650_v36, %s1799_s3 }
 0x394   :  { %v766_v37 = vpop.permute.xlu1 %765 }
 0x398   :  { %v768_v38 = vpop.permute.xlu1 %767 }
 0x399   :  { %v772_v32 = vsel %vm771_vm13, %v766_v37, %v768_v38 }
 0x39a   :  { %v776_v40 = vsel %vm664_vm14, 0.0, %v772_v32 }
 0x39c   :  { %v770_v39 = vpop.permute.xlu1 %769 }
 0x39d   :  { %v773_v41 = vsel %vm771_vm13, %v768_v38, %v770_v39  ;;  %v777_v46 = vsel %vm671_vm15, %v770_v39, 0.0  ;;  %vm1436_vm13 = vmpackc.low %vm1800_vm10, %vm1352_vm9 }
 0x39e   :  { %v1645_v43 = vpack.i.bf16 %v773_v41, %v776_v40 }
 0x3a0   :  { %1646 = vrot.lane.b32.xlu0 %v1645_v43, %s1785_s19  ;;  %v661_v44 = vpop.permute.xlu1 %660 }
 0x3a4   :  { %1651 = vrot.lane.b32.xlu0 %v1645_v43, %s1786_s20  ;;  %v663_v31 = vpop.permute.xlu1 %662 }
 0x3a5   :  { %v666_v49 = vsel %vm664_vm14, %v661_v44, %v663_v31 }
 0x3a6   :  { %v2159_v51 = vsel %vm671_vm15, %v666_v49, 0.0 }
 0x3a8   :  { %1656 = vrot.lane.b32.xlu0 %v1645_v43, %s1787_s21  ;;  %v2132_v45 = vpop.permute.xlu1 %658 }
 0x3a9   :  { %v2137_v47 = vsel %vm664_vm14, %v2132_v45, %v661_v44  ;;  %v670_v50 = vsel %vm664_vm14, 0.0, %v2132_v45 }
 0x3aa   :  { %v1610_v48 = vpack.i.bf16 %v2137_v47, %v777_v46  ;;  %v1685_v26 = vpack.i.bf16 %v670_v50, %v2159_v51 }
 0x3ac   :  { %1661 = vrot.lane.b32.xlu0 %v1645_v43, %s1788_s22  ;;  %1611 = vrot.lane.b32.xlu1 %v1610_v48, %s1785_s19 }
 0x3b0   :  { %1666 = vrot.lane.b32.xlu0 %v1645_v43, %s1789_s23  ;;  %1616 = vrot.lane.b32.xlu1 %v1610_v48, %s1786_s20 }
 0x3b4   :  { %1671 = vrot.lane.b32.xlu0 %v1645_v43, %s1790_s24  ;;  %1621 = vrot.lane.b32.xlu1 %v1610_v48, %s1787_s21 }
 0x3b8   :  { %1676 = vrot.lane.b32.xlu0 %v1645_v43, %s1791_s27  ;;  %1626 = vrot.lane.b32.xlu1 %v1610_v48, %s1788_s22 }
 0x3bc   :  { %836 = vrot.lane.b32.xlu0 %v776_v40, %s1792_s28  ;;  %1631 = vrot.lane.b32.xlu1 %v1610_v48, %s1789_s23 }
 0x3c0   :  { %840 = vrot.lane.b32.xlu0 %v777_v46, %s1792_s28  ;;  %1636 = vrot.lane.b32.xlu1 %v1610_v48, %s1790_s24 }
 0x3c4   :  { %754 = vrot.lane.b32.xlu0 %v2137_v47, %s1792_s28  ;;  %1641 = vrot.lane.b32.xlu1 %v1610_v48, %s1791_s27 }
 0x3c8   :  { %1686 = vrot.lane.b32.xlu0 %v1685_v26, %s1786_s20  ;;  %838 = vrot.lane.b32.xlu1 %v773_v41, %s1792_s28 }
 0x3cc   :  { %1696 = vrot.lane.b32.xlu0 %v1685_v26, %s1788_s22  ;;  %752 = vrot.lane.b32.xlu1 %v670_v50, %s1792_s28 }
 0x3d0   :  { %1706 = vrot.lane.b32.xlu0 %v1685_v26, %s1790_s24  ;;  %1681 = vrot.lane.b32.xlu1 %v1685_v26, %s1785_s19 }
 0x3d4   :  { %1716 = vrot.lane.b32.xlu0 %v1645_v43, %s1794_s0  ;;  %1691 = vrot.lane.b32.xlu1 %v1685_v26, %s1787_s21 }
 0x3d8   :  { %1701 = vrot.lane.b32.xlu1 %v1685_v26, %s1789_s23 }
 0x3dc   :  { %1711 = vrot.lane.b32.xlu1 %v1685_v26, %s1791_s27 }
 0x3e0   :  { %756 = vrot.lane.b32.xlu1 %v2159_v51, %s1792_s28 }
 0x412   :  { %v1647_v11 = vpop.permute.xlu0 %1646 }
 0x413   :  { %v1649_v13 = vunpack.i.h.bf16 %v1647_v11  ;;  %v1648_v14 = vunpack.i.l.bf16 %v1647_v11 }
 0x415   :  { %v786_v37 = vsel %vm50_vm0, %v1648_v14, %v1649_v13 }
 0x416   :  { %v1652_v28 = vpop.permute.xlu0 %1651 }
 0x417   :  { %v1654_v61 = vunpack.i.h.bf16 %v1652_v28  ;;  %v1653_v62 = vunpack.i.l.bf16 %v1652_v28 }
 0x419   :  { %v794_v5 = vsel %vm62_vm3, %v1653_v62, %v1654_v61 }
 0x41a   :  { %v1657_v52 = vpop.permute.xlu0 %1656 }
 0x41b   :  { %v1659_v34 = vunpack.i.h.bf16 %v1657_v52  ;;  %v1658_v36 = vunpack.i.l.bf16 %v1657_v52 }
 0x41d   :  { %v802_v49 = vsel %vm74_vm2, %v1658_v36, %v1659_v34 }
 0x41e   :  { %v2174_v53 = vpop.permute.xlu0 %1661  ;;  %v2176_v54 = vpop.permute.xlu1 %1611 }
 0x41f   :  { %v1613_v55 = vunpack.i.l.bf16 %v2176_v54  ;;  %v1664_v31 = vunpack.i.h.bf16 %v2174_v53 }
 0x421   :  { %v1720_v56 = vpack.i.bf16 %v1613_v55, %v777_v46  ;;  %v787_v29 = vsel %vm50_vm0, %v1649_v13, %v1613_v55  ;;  %v1663_v46 = vunpack.i.l.bf16 %v2174_v53 }
 0x422   :  { %v1667_v57 = vpop.permute.xlu0 %1666  ;;  %v2179_v6 = vpop.permute.xlu1 %1616  ;;  %v1735_v38 = vpack.i.bf16 %v787_v29, %v786_v37 }
 0x423   :  { %1721 = vrot.lane.b32.xlu0 %v1720_v56, %s1794_s0  ;;  %v1618_v23 = vunpack.i.l.bf16 %v2179_v6  ;;  %v1669_v4 = vunpack.i.h.bf16 %v1667_v57  ;;  %v1668_v63 = vunpack.i.l.bf16 %v1667_v57  ;;  %v810_v56 = vsel %vm86_vm4, %v1663_v46, %v1664_v31 }
 0x425   :  { %v795_v3 = vsel %vm62_vm3, %v1654_v61, %v1618_v23  ;;  %v818_v15 = vsel %vm98_vm5, %v1668_v63, %v1669_v4 }
 0x426   :  { %v1672_v58 = vpop.permute.xlu0 %1671  ;;  %v2183_v59 = vpop.permute.xlu1 %1621  ;;  %v1740_v7 = vpack.i.bf16 %v795_v3, %v794_v5  ;;  %v1614_v3 = vunpack.i.h.bf16 %v2176_v54 }
 0x427   :  { %v1623_v60 = vunpack.i.l.bf16 %v2183_v59  ;;  %v1674_v16 = vunpack.i.h.bf16 %v1672_v58  ;;  %v1673_v17 = vunpack.i.l.bf16 %v1672_v58 }
 0x429   :  { %v1725_v1 = vpack.i.bf16 %v1623_v60, %v1618_v23  ;;  %v826_v32 = vsel %vm110_vm6, %v1673_v17, %v1674_v16  ;;  %v803_v43 = vsel %vm74_vm2, %v1659_v34, %v1623_v60  ;;  %v1619_v17 = vunpack.i.h.bf16 %v2179_v6 }
 0x42a   :  { %v1677_v0 = vpop.permute.xlu0 %1676  ;;  %v2186_v2 = vpop.permute.xlu1 %1626  ;;  %v1745_v26 = vpack.i.bf16 %v803_v43, %v802_v49 }
 0x42b   :  { %1726 = vrot.lane.b32.xlu0 %v1725_v1, %s1794_s0  ;;  %v1628_v10 = vunpack.i.l.bf16 %v2186_v2  ;;  %v1679_v52 = vunpack.i.h.bf16 %v1677_v0  ;;  %v1678_v55 = vunpack.i.l.bf16 %v1677_v0  ;;  %v954_v1 = vld [vmem:[%s2511_s6] sm:$0xff] }
 0x42d   :  { %v811_v28 = vsel %vm86_vm4, %v1664_v31, %v1628_v10  ;;  %v834_v61 = vsel %vm122_vm7, %v1678_v55, %v1679_v52 }
 0x42e   :  { %v2191_v8 = vpop.permute.xlu0 %836  ;;  %v2193_v9 = vpop.permute.xlu1 %1631  ;;  %v1750_v53 = vpack.i.bf16 %v811_v28, %v810_v56 }
 0x42f   :  { %v1633_v12 = vunpack.i.l.bf16 %v2193_v9  ;;  %1741 = vrot.lane.b32.xlu0 %v1740_v7, %s1794_s0 }
 0x431   :  { %v1730_v18 = vpack.i.bf16 %v1633_v12, %v1628_v10  ;;  %v819_v20 = vsel %vm98_vm5, %v1669_v4, %v1633_v12 }
 0x432   :  { %v2200_v21 = vpop.permute.xlu0 %840  ;;  %v2202_v25 = vpop.permute.xlu1 %1636  ;;  %v1755_v27 = vpack.i.bf16 %v819_v20, %v818_v15 }
 0x433   :  { %v1638_v33 = vunpack.i.l.bf16 %v2202_v25  ;;  %1731 = vrot.lane.b32.xlu1 %v1730_v18, %s1794_s0  ;;  %v1624_v18 = vunpack.i.h.bf16 %v2183_v59 }
 0x434   :  { %1756 = vrot.lane.b32.xlu0 %v1755_v27, %s1794_s0 }
 0x435   :  { %v827_v39 = vsel %vm110_vm6, %v1674_v16, %v1638_v33 }
 0x436   :  { %v2211_v40 = vpop.permute.xlu1 %1641  ;;  %v1760_v41 = vpack.i.bf16 %v827_v39, %v826_v32  ;;  %v2218_v48 = vpop.permute.xlu0 %754  ;;  %v1634_v32 = vunpack.i.h.bf16 %v2193_v9 }
 0x437   :  { %v1643_v44 = vunpack.i.l.bf16 %v2211_v40  ;;  %1736 = vrot.lane.b32.xlu1 %v1735_v38, %s1794_s0  ;;  %v1644_v28 = vunpack.i.h.bf16 %v2211_v40 }
 0x438   :  { %1761 = vrot.lane.b32.xlu0 %v1760_v41, %s1794_s0 }
 0x439   :  { %v1765_v50 = vpack.i.bf16 %v1643_v44, %v1638_v33  ;;  %v835_v58 = vsel %vm122_vm7, %v1679_v52, %v1643_v44  ;;  %v1629_v33 = vunpack.i.h.bf16 %v2186_v2  ;;  %v955_v2 = vld [vmem:[%s2511_s6 + $0x8] sm:$0xff] }
 0x43a   :  { %v839_v11 = vpop.permute.xlu1 %838  ;;  %v2226_v57 = vpop.permute.xlu0 %1686  ;;  %v1770_v62 = vpack.i.bf16 %v835_v58, %v834_v61 }
 0x43b   :  { %1746 = vrot.lane.b32.xlu1 %v1745_v26, %s1794_s0  ;;  %v843_v60 = vsel %vm134_vm8, %v839_v11, %v2200_v21  ;;  %v1689_v7 = vunpack.i.h.bf16 %v2226_v57  ;;  %v1688_v10 = vunpack.i.l.bf16 %v2226_v57  ;;  %v842_v15 = vsel %vm134_vm8, %v2191_v8, %v839_v11 }
 0x43c   :  { %1766 = vrot.lane.b32.xlu0 %v1765_v50, %s1794_s0  ;;  %v1639_v11 = vunpack.i.h.bf16 %v2202_v25 }
 0x43d   :  { %v692_v8 = vsel %vm62_vm3, %v1689_v7, %v1619_v17  ;;  %v693_v6 = vsel %vm62_vm3, %v1619_v17, %v1688_v10 }
 0x43e   :  { %v2228_v23 = vpop.permute.xlu1 %752  ;;  %v2246_v5 = vpop.permute.xlu0 %1696 }
 0x43f   :  { %1751 = vrot.lane.b32.xlu1 %v1750_v53, %s1794_s0  ;;  %v1698_v29 = vunpack.i.l.bf16 %v2246_v5 }
 0x440   :  { %894 = vrot.lane.b32.xlu0 %v843_v60, %s1794_s0 }
 0x441   :  { %v715_v44 = vsel %vm86_vm4, %v1629_v33, %v1698_v29 }
 0x442   :  { %v2239_v0 = vpop.permute.xlu1 %1681  ;;  %v2276_v34 = vpop.permute.xlu0 %1706 }
 0x443   :  { %v1684_v4 = vunpack.i.h.bf16 %v2239_v0  ;;  %v1683_v63 = vunpack.i.l.bf16 %v2239_v0  ;;  %1771 = vrot.lane.b32.xlu1 %v1770_v62, %s1794_s0  ;;  %v1709_v9 = vunpack.i.h.bf16 %v2276_v34  ;;  %v1708_v31 = vunpack.i.l.bf16 %v2276_v34 }
 0x444   :  { %958 = vperm.xlu0 %1609, %v954_v1   ;;  %v2320_v1 = vld [vmem:[%s2512_s5] sm:$0xff] }
 0x445   :  { %v681_v12 = vsel %vm50_vm0, %v1684_v4, %v1614_v3  ;;  %v682_v54 = vsel %vm50_vm0, %v1614_v3, %v1683_v63  ;;  %v736_v56 = vsel %vm110_vm6, %v1709_v9, %v1639_v11  ;;  %v737_v58 = vsel %vm110_vm6, %v1639_v11, %v1708_v31  ;;  %v2331_v4 = vld [vmem:[%s2512_s5 + $0x8] sm:$0xff] }
 0x446   :  { %v1435_v13 = vpack.c.bf16 %v681_v12, %v2132_v45  ;;  %v2255_v14 = vpop.permute.xlu1 %1691  ;;  %v1433_v16 = vpack.c.bf16 %v682_v54, %v2137_v47  ;;  %v1699_v45 = vunpack.i.h.bf16 %v2246_v5  ;;  %vm966_vm0 = vcmask 588800   ;;  %v1717_v7 = vpop.permute.xlu0 %1716 }
 0x447   :  { %v1694_v20 = vunpack.i.h.bf16 %v2255_v14  ;;  %v1693_v27 = vunpack.i.l.bf16 %v2255_v14  ;;  %892 = vrot.lane.b32.xlu1 %v842_v15, %s1794_s0  ;;  %v758_v3 = vsel %vm134_vm8, %v2228_v23, %v2218_v48 }
 0x448   :  { %1434 = vmatprep.subr.bf16.mxu1 %v1433_v16  ;;  %v714_v43 = vsel %vm86_vm4, %v1699_v45, %v1629_v33  ;;  %v1719_v16 = vunpack.i.h.bf16 %v1717_v7 }
 0x449   :  { %v703_v47 = vsel %vm74_vm2, %v1694_v20, %v1624_v18  ;;  %1437 = vmatpush1.bf16.msk.msra.mxu1 %vm1436_vm13, %v1435_v13  ;;  %v704_v59 = vsel %vm74_vm2, %v1624_v18, %v1693_v27  ;;  %v1718_v13 = vunpack.i.l.bf16 %v1717_v7 }
 0x44a   :  { %v1440_v36 = vpack.c.bf16 %v703_v47, %v692_v8  ;;  %v2278_v37 = vpop.permute.xlu1 %1701  ;;  %v1438_v38 = vpack.c.bf16 %v704_v59, %v693_v6 }
 0x44b   :  { %v1704_v39 = vunpack.i.h.bf16 %v2278_v37  ;;  %v1703_v41 = vunpack.i.l.bf16 %v2278_v37  ;;  %896 = vrot.lane.b32.xlu1 %v2200_v21, %s1794_s0  ;;  %v943_v20 = vsel %vm299_vm11, %v2159_v51, %v1718_v13 }
 0x44c   :  { %1439 = vmatprep.subr.bf16.mxu1 %v1438_v38 }
 0x44d   :  { %v725_v46 = vsel %vm98_vm5, %v1704_v39, %v1634_v32  ;;  %1441 = vmatpush1.bf16.msra.mxu1 %v1440_v36  ;;  %v726_v21 = vsel %vm98_vm5, %v1634_v32, %v1703_v41  ;;  %v898_v36 = vsel %vm299_vm11, %v1718_v13, %v1719_v16 }
 0x44e   :  { %v1444_v49 = vpack.c.bf16 %v725_v46, %v714_v43  ;;  %v2298_v50 = vpop.permute.xlu1 %1711  ;;  %v1442_v26 = vpack.c.bf16 %v726_v21, %v715_v44 }
 0x44f   :  { %v1714_v52 = vunpack.i.h.bf16 %v2298_v50  ;;  %v1713_v55 = vunpack.i.l.bf16 %v2298_v50  ;;  %963 = vperm.xlu1 %1608, %v955_v2  }
 0x450   :  { %1443 = vmatprep.subr.bf16.mxu1 %v1442_v26 }
 0x451   :  { %v747_v53 = vsel %vm122_vm7, %v1714_v52, %v1644_v28  ;;  %1445 = vmatpush1.bf16.msra.mxu1 %v1444_v49  ;;  %v748_v25 = vsel %vm122_vm7, %v1644_v28, %v1713_v55 }
 0x452   :  { %v1448_v40 = vpack.c.bf16 %v747_v53, %v736_v56  ;;  %v2312_v60 = vpop.permute.xlu1 %756  ;;  %v1446_v61 = vpack.c.bf16 %v748_v25, %v737_v58 }
 0x453   :  { %v759_v62 = vsel %vm134_vm8, %v2218_v48, %v2312_v60 }
 0x454   :  { %1447 = vmatprep.subr.bf16.mxu1 %v1446_v61 }
 0x455   :  { %1449 = vmatpush1.bf16.msra.mxu1 %v1448_v40 }
 0x456   :  { %989 = vmatprep.subr.mxu1 %v759_v62 }
 0x459   :  { %990 = vmatpush1.msra.mxu1 %v758_v3 }
 0x45a   :  { %1354 = vmatmul.mubr.msk.f32.vlgmr.msra.gmra.mrb[2].mxu1 %vm966_vm0, %v2320_v1 }
 0x45b   :  { %1043 = vmatprep.mubr.f32.mxu1 %v1793_v30 }
 0x45e   :  { %1355 = vmatmul.mubr.msk.f32.gmra.mrb[4].mxu1 %vm966_vm0, %v2331_v4 }
 0x45f   :  { %1408 = vmatprep.mubr.msk.f32.mxu1 %vm966_vm0, %v2320_v1 }
 0x495   :  { %v1722_v12 = vpop.permute.xlu0 %1721 }
 0x496   :  { %v1723_v17 = vunpack.i.l.bf16 %v1722_v12  ;;  %v1724_v45 = vunpack.i.h.bf16 %v1722_v12 }
 0x498   :  { %v899_v38 = vsel %vm299_vm11, %v1719_v16, %v1723_v17 }
 0x49d   :  { %v1727_v48 = vpop.permute.xlu0 %1726 }
 0x49e   :  { %v1729_v32 = vunpack.i.h.bf16 %v1727_v48  ;;  %v1728_v2 = vunpack.i.l.bf16 %v1727_v48 }
 0x4a1   :  { %v1742_v23 = vpop.permute.xlu0 %1741 }
 0x4a2   :  { %v1744_v59 = vunpack.i.h.bf16 %v1742_v23  ;;  %v1743_v33 = vunpack.i.l.bf16 %v1742_v23 }
 0x4a4   :  { %v945_v52 = vsel %vm299_vm11, %v1688_v10, %v1743_v33  ;;  %v903_v56 = vsel %vm299_vm11, %v1744_v59, %v1728_v2 }
 0x4a5   :  { %v1732_v54 = vpop.permute.xlu1 %1731 }
 0x4a6   :  { %v1757_v15 = vpop.permute.xlu0 %1756  ;;  %v1734_v0 = vunpack.i.h.bf16 %v1732_v54  ;;  %v1733_v40 = vunpack.i.l.bf16 %v1732_v54 }
 0x4a7   :  { %v1759_v49 = vunpack.i.h.bf16 %v1757_v15  ;;  %v1758_v26 = vunpack.i.l.bf16 %v1757_v15 }
 0x4a9   :  { %v1737_v18 = vpop.permute.xlu1 %1736  ;;  %v948_v7 = vsel %vm299_vm11, %v1703_v41, %v1758_v26  ;;  %v909_v54 = vsel %vm299_vm11, %v1759_v49, %v1734_v0 }
 0x4aa   :  { %v1739_v8 = vunpack.i.h.bf16 %v1737_v18  ;;  %v1738_v47 = vunpack.i.l.bf16 %v1737_v18  ;;  %v2339_v6 = vpop.permute.xlu0 %1761 }
 0x4ab   :  { %v1764_v48 = vunpack.i.h.bf16 %v2339_v6  ;;  %v1763_v23 = vunpack.i.l.bf16 %v2339_v6 }
 0x4ac   :  { %v944_v39 = vsel %vm299_vm11, %v1683_v63, %v1738_v47  ;;  %v900_v43 = vsel %vm299_vm11, %v1738_v47, %v1739_v8  ;;  %v901_v51 = vsel %vm299_vm11, %v1739_v8, %v1724_v45  ;;  %v902_v63 = vsel %vm299_vm11, %v1743_v33, %v1744_v59 }
 0x4ad   :  { %v1452_v44 = vpack.c.bf16 %v944_v39, %v943_v20  ;;  %v1747_v9 = vpop.permute.xlu1 %1746  ;;  %v1450_v46 = vpack.c.bf16 %v900_v43, %v898_v36  ;;  %v1466_v21 = vpack.c.bf16 %v901_v51, %v899_v38  ;;  %v949_v6 = vsel %vm299_vm11, %v1708_v31, %v1763_v23 }
 0x4ae   :  { %v1749_v11 = vunpack.i.h.bf16 %v1747_v9  ;;  %v1748_v28 = vunpack.i.l.bf16 %v1747_v9  ;;  %v1767_v58 = vpop.permute.xlu0 %1766  ;;  %v910_v5 = vsel %vm299_vm11, %v1763_v23, %v1764_v48 }
 0x4af   :  { %1451 = vmatprep.subr.bf16.mxu0 %v1450_v46  ;;  %1467 = vmatprep.subr.bf16.mxu1 %v1466_v21  ;;  %v1768_v13 = vunpack.i.l.bf16 %v1767_v58  ;;  %v1769_v45 = vunpack.i.h.bf16 %v1767_v58 }
 0x4b0   :  { %v946_v53 = vsel %vm299_vm11, %v1693_v27, %v1748_v28  ;;  %1453 = vmatpush1.bf16.msra.mxu0 %v1452_v44  ;;  %1469 = vmatpush3.bf16.msra.mxu1 %v1466_v21  ;;  %v904_v25 = vsel %vm299_vm11, %v1748_v28, %v1749_v11  ;;  %v905_v57 = vsel %vm299_vm11, %v1749_v11, %v1729_v32 }
 0x4b1   :  { %v1456_v10 = vpack.c.bf16 %v946_v53, %v945_v52  ;;  %v1752_v61 = vpop.permute.xlu1 %1751  ;;  %v1454_v62 = vpack.c.bf16 %v904_v25, %v902_v63  ;;  %v1470_v3 = vpack.c.bf16 %v905_v57, %v903_v56  ;;  %v908_v27 = vsel %vm299_vm11, %v1758_v26, %v1759_v49 }
 0x4b2   :  { %v1754_v12 = vunpack.i.h.bf16 %v1752_v61  ;;  %v1753_v14 = vunpack.i.l.bf16 %v1752_v61  ;;  %v895_v39 = vpop.permute.xlu0 %894 }
 0x4b3   :  { %1455 = vmatprep.subr.bf16.mxu0 %v1454_v62  ;;  %1471 = vmatprep.subr.bf16.mxu1 %v1470_v3 }
 0x4b4   :  { %v947_v15 = vsel %vm299_vm11, %v1698_v29, %v1753_v14  ;;  %1457 = vmatpush1.bf16.msra.mxu0 %v1456_v10  ;;  %1473 = vmatpush3.bf16.msra.mxu1 %v1470_v3  ;;  %v906_v37 = vsel %vm299_vm11, %v1753_v14, %v1754_v12  ;;  %v907_v41 = vsel %vm299_vm11, %v1754_v12, %v1733_v40 }
 0x4b5   :  { %v1460_v16 = vpack.c.bf16 %v948_v7, %v947_v15  ;;  %v1772_v17 = vpop.permute.xlu1 %1771  ;;  %v1458_v18 = vpack.c.bf16 %v908_v27, %v906_v37  ;;  %v1474_v20 = vpack.c.bf16 %v909_v54, %v907_v41  ;;  %v911_v29 = vsel %vm299_vm11, %v1764_v48, %v1768_v13 }
 0x4b6   :  { %v1774_v8 = vunpack.i.h.bf16 %v1772_v17  ;;  %v1773_v47 = vunpack.i.l.bf16 %v1772_v17 }
 0x4b7   :  { %1459 = vmatprep.subr.bf16.mxu0 %v1458_v18  ;;  %1475 = vmatprep.subr.bf16.mxu1 %v1474_v20 }
 0x4b8   :  { %v950_v59 = vsel %vm299_vm11, %v1713_v55, %v1773_v47  ;;  %1461 = vmatpush1.bf16.msra.mxu0 %v1460_v16  ;;  %1477 = vmatpush3.bf16.msra.mxu1 %v1474_v20  ;;  %v912_v33 = vsel %vm299_vm11, %v1773_v47, %v1774_v8  ;;  %v913_v36 = vsel %vm299_vm11, %v1774_v8, %v1769_v45 }
 0x4b9   :  { %v1464_v38 = vpack.c.bf16 %v950_v59, %v949_v6  ;;  %v893_v34 = vpop.permute.xlu1 %892  ;;  %v1462_v32 = vpack.c.bf16 %v912_v33, %v910_v5  ;;  %v1478_v31 = vpack.c.bf16 %v913_v36, %v911_v29 }
 0x4ba   :  { %v914_v43 = vsel %vm299_vm11, %v893_v34, %v895_v39  ;;  %v951_v51 = vsel %vm299_vm11, %v2312_v60, %v893_v34 }
 0x4bb   :  { %1463 = vmatprep.subr.bf16.mxu0 %v1462_v32  ;;  %1479 = vmatprep.subr.bf16.mxu1 %v1478_v31 }
 0x4bc   :  { %1465 = vmatpush1.bf16.msra.mxu0 %v1464_v38  ;;  %1481 = vmatpush3.bf16.msra.mxu1 %v1478_v31 }
 0x4bd   :  { %v897_v50 = vpop.permute.xlu1 %896  ;;  %1066 = vmatprep.subr.mxu0 %v914_v43 }
 0x4be   :  { %v915_v55 = vsel %vm299_vm11, %v895_v39, %v897_v50 }
 0x4bf   :  { %1406 = vmatprep.subr.mxu1 %v915_v55 }
 0x4c0   :  { %1067 = vmatpush1.msra.mxu0 %v951_v51  ;;  %1407 = vmatpush3.msra.mxu1 %v915_v55 }
 0x4c1   :  { %1356 = vmatmul.mubr.msk.f32.vlgmr.msra.gmra.mrb[4].mxu0 %vm966_vm0, %v2320_v1  ;;  %1409 = vmatmul.mubr.msk.f32.vlgmr.msra.gmra.mrb[6].mxu1 %vm966_vm0, %v2331_v4 }
 0x4c2   :  { %1120 = vmatprep.mubr.f32.mxu0 %v1793_v30 }
 0x4c3   :  { %v959_v21 = vpop.permute.xlu0 %958 }
 0x4c5   :  { %1357 = vmatmul.mubr.msk.f32.gmra.mrb[6].mxu0 %vm966_vm0, %v2331_v4 }
 0x4ce   :  { %v964_v26 = vpop.permute.xlu1 %963 }
 0x52d   :  { %v1039_v2 = vpop.f32.mrb[2].mxu1 }
 0x52e   :  { %v1041_v44 = vpop.f32.mrb[3].mxu1  ;;  %v1040_v60 = vadd.f32 %v1039_v2, %v959_v21 }
 0x52f   :  { %v1042_v49 = vadd.f32 %v1041_v44, %v959_v21 }
 0x530   :  { %v1202_v52 = vmax.f32 %v1040_v60, 0.0 }
 0x531   :  { %v1045_v9 = vpop.f32.mrb[4].mxu1  ;;  %v1203_v1 = vmax.f32 %v1042_v49, 0.0 }
 0x532   :  { %v1047_v46 = vpop.f32.mrb[5].mxu1  ;;  %v1046_v11 = vadd.f32 %v1045_v9, %v964_v26  ;;  %v2392_v56 = vmul.f32 %v1202_v52, %v2088_v19 }
 0x533   :  { %v1048_v28 = vadd.f32 %v1047_v46, %v964_v26  ;;  %v2395_v30 = vmul.f32 %v1203_v1, %v2090_v24 }
 0x534   :  { %v1207_v0 = vmax.f32 %v1046_v11, 0.0  ;;  %v1236_v7 = vmul.f32 %v2392_v56, %v2392_v56 }
 0x535   :  { %v1208_v63 = vmax.f32 %v1048_v28, 0.0  ;;  %v1237_v12 = vmul.f32 %v2395_v30, %v2395_v30 }
 0x536   :  { %v2398_v58 = vmul.f32 %v1207_v0, %v2088_v19 }
 0x537   :  { %v2401_v25 = vmul.f32 %v1208_v63, %v2090_v24  ;;  %v1222_v24 = vadd.f32 %v2395_v30, %v2392_v56  ;;  %v1246_v20 = vadd.f32 %v1237_v12, %v1236_v7 }
 0x538   :  { %v1241_v23 = vmul.f32 %v2398_v58, %v2398_v58 }
 0x539   :  { %v1242_v13 = vmul.f32 %v2401_v25, %v2401_v25  ;;  %v1229_v38 = vadd.f32 %v2401_v25, %v2398_v58 }
 0x53b   :  { %v1253_v39 = vadd.f32 %v1242_v13, %v1241_v23 }
 0x594   :  { %v1116_v4 = vpop.f32.mrb[4].mxu0  ;;  %v1410_v53 = vpop.f32.mrb[6].mxu1 }
 0x595   :  { %v1117_v57 = vadd.f32 %v1116_v4, %v959_v21  ;;  %v1118_v40 = vpop.f32.mrb[5].mxu0  ;;  %v1193_v10 = vpop.f32.mrb[7].mxu1  ;;  %v1199_v61 = vadd.f32 %v1410_v53, %v964_v26 }
 0x596   :  { %v1119_v62 = vadd.f32 %v1118_v40, %v959_v21  ;;  %v1194_v3 = vadd.f32 %v1193_v10, %v959_v21 }
 0x597   :  { %v1204_v14 = vmax.f32 %v1117_v57, 0.0  ;;  %v1211_v41 = vmax.f32 %v1199_v61, 0.0 }
 0x598   :  { %v1205_v27 = vmax.f32 %v1119_v62, 0.0  ;;  %v1206_v48 = vmax.f32 %v1194_v3, 0.0  ;;  %v1122_v19 = vpop.f32.mrb[6].mxu0 }
 0x599   :  { %v2414_v54 = vmul.f32 %v1204_v14, %v2100_v22  ;;  %v1123_v15 = vadd.f32 %v1122_v19, %v964_v26  ;;  %v1124_v37 = vpop.f32.mrb[7].mxu0  ;;  %v2436_v34 = vmul.f32 %v1211_v41, %v2098_v35 }
 0x59a   :  { %v2417_v16 = vmul.f32 %v1205_v27, %v2102_v42  ;;  %v2420_v17 = vmul.f32 %v1206_v48, %v2098_v35  ;;  %v1125_v18 = vadd.f32 %v1124_v37, %v964_v26 }
 0x59b   :  { %v1238_v45 = vmul.f32 %v2414_v54, %v2414_v54  ;;  %v1209_v8 = vmax.f32 %v1123_v15, 0.0  ;;  %v1223_v47 = vadd.f32 %v1222_v24, %v2414_v54  ;;  %v1232_v9 = vsel %vm601_vm12, %v2436_v34, 0.0  ;;  %v1283_v24 = vld [vmem:[%s2513_s7] sm:$0xf] }
 0x59c   :  { %v1239_v6 = vmul.f32 %v2417_v16, %v2417_v16  ;;  %v1210_v5 = vmax.f32 %v1125_v18, 0.0  ;;  %v1240_v29 = vmul.f32 %v2420_v17, %v2420_v17  ;;  %v1225_v31 = vsel %vm601_vm12, %v2420_v17, 0.0  ;;  %v1287_v15 = vld [vmem:[%s2514_s8] sm:$0xf] }
 0x59d   :  { %v2430_v59 = vmul.f32 %v1209_v8, %v2100_v22  ;;  %v1224_v33 = vadd.f32 %v1223_v47, %v2417_v16  ;;  %v1247_v36 = vadd.f32 %v1246_v20, %v1238_v45  ;;  %v1245_v46 = vmul.f32 %v2436_v34, %v2436_v34 }
 0x59e   :  { %v2439_v32 = vmul.f32 %v1210_v5, %v2102_v42  ;;  %v1249_v51 = vsel %vm601_vm12, %v1240_v29, 0.0 }
 0x59f   :  { %v1226_v43 = vadd.f32 %v1225_v31, %v1224_v33  ;;  %v1248_v50 = vadd.f32 %v1247_v36, %v1239_v6  ;;  %v1230_v22 = vadd.f32 %v1229_v38, %v2430_v59  ;;  %v1243_v55 = vmul.f32 %v2430_v59, %v2430_v59 }
 0x5a0   :  { %v1244_v35 = vmul.f32 %v2439_v32, %v2439_v32  ;;  %v1256_v49 = vsel %vm601_vm12, %v1245_v46, 0.0 }
 0x5a1   :  { %1227 = vadd.xlane.f32.xlu0 %v1226_v43  ;;  %v1250_v2 = vadd.f32 %v1249_v51, %v1248_v50  ;;  %v1231_v42 = vadd.f32 %v1230_v22, %v2439_v32  ;;  %v1254_v44 = vadd.f32 %v1253_v39, %v1243_v55 }
 0x5a3   :  { %1251 = vadd.xlane.f32.xlu1 %v1250_v2  ;;  %v1233_v21 = vadd.f32 %v1232_v9, %v1231_v42  ;;  %v1255_v60 = vadd.f32 %v1254_v44, %v1244_v35 }
 0x5a5   :  { %1234 = vadd.xlane.f32.xlu0 %v1233_v21  ;;  %v1257_v26 = vadd.f32 %v1256_v49, %v1255_v60 }
 0x5a9   :  { %1258 = vadd.xlane.f32.xlu0 %v1257_v26 }
 0x62e   :  { %v1228_v11 = vpop.xlane.xlu0 %1227 }
 0x62f   :  { %v1261_v28 = vrot.slane %v1228_v11, 4 }
 0x630   :  { %v1252_v52 = vpop.xlane.xlu1 %1251 }
 0x631   :  { %v1263_v1 = vadd.f32 %v1261_v28, %v1228_v11  ;;  %v1270_v0 = vrot.slane %v1252_v52, 4 }
 0x632   :  { %v1235_v63 = vpop.xlane.xlu0 %1234 }
 0x633   :  { %v1264_v4 = vadd.f32 %v1263_v1, %v1235_v63  ;;  %v1266_v53 = vrot.slane %v1235_v63, 4  ;;  %v1272_v57 = vadd.f32 %v1270_v0, %v1252_v52 }
 0x635   :  { %v1268_v40 = vadd.f32 %v1266_v53, %v1264_v4 }
 0x636   :  { %v1259_v10 = vpop.xlane.xlu0 %1258 }
 0x637   :  { %v1278_v61 = vmul.f32 0.00048828125, %v1268_v40  ;;  %v1273_v62 = vadd.f32 %v1272_v57, %v1259_v10  ;;  %v1275_v3 = vrot.slane %v1259_v10, 4 }
 0x639   :  { %v1277_v7 = vadd.f32 %v1275_v3, %v1273_v62  ;;  %v1280_v12 = vmul.f32 %v1278_v61, %v1278_v61 }
 0x63b   :  { %v1279_v14 = vmul.f32 0.00048828125, %v1277_v7 }
 0x63d   :  { %v1281_v27 = vsub.f32 %v1279_v14, %v1280_v12 }
 0x63f   :  { %v1282_v48 = vmax.f32 %v1281_v27, 0.0 }
 0x641   :  { %v1284_v19 = vadd.f32 1e-05, %v1282_v48 }
 0x643   :  { %1783 = vrsqrt.f32 %v1284_v19 }
 0x64d   :  { %v1784_v23 = vpop.eup %1783 }
 0x64e   :  { %v1286_v13 = vmul.f32 %v1784_v23, %v1283_v24 }
 0x650   :  { %v1291_v37 = vrot.slane %v1286_v13, 4  ;;  %v1288_v41 = vmul.f32 %v1286_v13, %v1278_v61 }
 0x652   :  { %v1293_v18 = vsel %vm138_vm1, %v1286_v13, %v1291_v37  ;;  %v1289_v20 = vsub.f32 %v1287_v15, %v1288_v41 }
 0x653   :  { %1300 = vperm.xlu1 %1608, %v1293_v18  }
 0x654   :  { %v1295_v45 = vrot.slane %v1289_v20, 4 }
 0x656   :  { %v1297_v8 = vsel %vm138_vm1, %v1289_v20, %v1295_v45 }
 0x657   :  { %1315 = vperm.xlu0 %1609, %v1297_v8  }
 0x6d2   :  { %v1301_v47 = vpop.permute.xlu1 %1300 }
 0x6d3   :  { %v1303_v6 = vmul.f32 %v1301_v47, %v2392_v56  ;;  %v1304_v5 = vmul.f32 %v1301_v47, %v2395_v30  ;;  %v1305_v29 = vmul.f32 %v1301_v47, %v2414_v54  ;;  %v1306_v33 = vmul.f32 %v1301_v47, %v2417_v16 }
 0x6d4   :  { %v1307_v36 = vmul.f32 %v1301_v47, %v2420_v17  ;;  %v1308_v38 = vmul.f32 %v1301_v47, %v2398_v58  ;;  %v1309_v31 = vmul.f32 %v1301_v47, %v2401_v25  ;;  %v1310_v39 = vmul.f32 %v1301_v47, %v2430_v59 }
 0x6d5   :  { %v1311_v43 = vmul.f32 %v1301_v47, %v2439_v32  ;;  %v1312_v50 = vmul.f32 %v1301_v47, %v2436_v34 }
 0x6d6   :  { %v1316_v22 = vpop.permute.xlu0 %1315 }
 0x6d7   :  { %v1318_v56 = vadd.f32 %v1316_v22, %v1303_v6  ;;  %v1319_v55 = vadd.f32 %v1316_v22, %v1304_v5  ;;  %v1320_v30 = vadd.f32 %v1316_v22, %v1305_v29  ;;  %v1321_v51 = vadd.f32 %v1316_v22, %v1306_v33 }
 0x6d8   :  { %v1322_v54 = vadd.f32 %v1316_v22, %v1307_v36  ;;  %v1323_v35 = vadd.f32 %v1316_v22, %v1308_v38  ;;  %v1324_v16 = vadd.f32 %v1316_v22, %v1309_v31  ;;  %v1325_v2 = vadd.f32 %v1316_v22, %v1310_v39 }
 0x6d9   :  { %v1326_v17 = vadd.f32 %v1316_v22, %v1311_v43  ;;  %v1327_v42 = vadd.f32 %v1316_v22, %v1312_v50  ;;  %1328 = vst [vmem:[%s2515_s10] sm:$0xff] %v1318_v56  ;;  %1329 = vst [vmem:[%s2515_s10 + $0x8] sm:$0xff] %v1319_v55 }
 0x6da   :  { %1330 = vst [vmem:[%s2515_s10 + $0x10] sm:$0xff] %v1320_v30  ;;  %1331 = vst [vmem:[%s2515_s10 + $0x18] sm:$0xff] %v1321_v51 }
 0x6db   :  { %1332 = vst.msk [vmem:[%s2515_s10 + $0x20] sm:$0xff] %vm601_vm12, %v1322_v54  ;;  %1333 = vst [vmem:[%s2515_s10 + $0x28] sm:$0xff] %v1323_v35 }
 0x6dc   :  { %1334 = vst [vmem:[%s2515_s10 + $0x30] sm:$0xff] %v1324_v16  ;;  %1335 = vst [vmem:[%s2515_s10 + $0x38] sm:$0xff] %v1325_v2 }
 0x6dd   :  { %1336 = vst [vmem:[%s2515_s10 + $0x40] sm:$0xff] %v1326_v17  ;;  %1337 = vst.msk [vmem:[%s2515_s10 + $0x48] sm:$0xff] %vm601_vm12, %v1327_v42 }

</bundles_post_ra>
